<compile_context>
chip_gen: v5e
topology: v5e:2x2
jax: 0.10.0
libtpu: 0.0.40
codegen_flags: <defaults>
</compile_context>

<pallas_src>
import jax
import jax.numpy as jnp
from jax.experimental import pallas as pl
from jax.experimental.pallas import tpu as pltpu

IN_DIM = 28 * 28          # 784
IN_PAD = 896              # 7 * 128, lane-dense K for layer 1
H1 = 512
H2 = 256
H3 = 64
H3_PAD = 128              # fc3 output padded to a full 128-lane register
OUT_DIM = 10
OUT_PAD = 128             # logits padded to a full 128-lane register (dense vst)

MAX_TB = 1024             # v7x (64 MiB VMEM) safety cap on the batch tile


def mlp_kernel(x_ref,
               w1_ref, b1_ref,
               w2_ref, b2_ref,
               w3_ref, b3_ref,
               w4_ref, b4_ref,
               o_ref):
    x = x_ref[...]  # (TB, 896) bf16

    h1 = jnp.dot(x, w1_ref[...], preferred_element_type=jnp.float32) + b1_ref[...]
    h1 = jnp.maximum(h1, 0.0).astype(jnp.bfloat16)

    h2 = jnp.dot(h1, w2_ref[...], preferred_element_type=jnp.float32) + b2_ref[...]
    h2 = jnp.maximum(h2, 0.0).astype(jnp.bfloat16)

    h3 = jnp.dot(h2, w3_ref[...], preferred_element_type=jnp.float32) + b3_ref[...]
    h3 = jnp.maximum(h3, 0.0).astype(jnp.bfloat16)  # padded lanes stay exactly 0

    h4 = jnp.dot(h3, w4_ref[...], preferred_element_type=jnp.float32) + b4_ref[...]
    o_ref[...] = h4.astype(o_ref.dtype)  # (TB, 128) f32, lane-dense store


def _choose_batch_tile(B, block_b):
    """Batch tile: multiple of 16 (bf16 sublane tile), <= block_b, <= MAX_TB,
    and such that the grid has >= 2 steps whenever the batch allows (v7x dual TC)."""
    b16 = ((B + 15) // 16) * 16
    tb = min(block_b, b16)
    if b16 >= 32 and b16 <= tb:
        # Whole batch would fit in one tile -> split it in two so both v7x
        # TensorCores get work (harmless on v5e/v6e).
        tb = ((b16 // 2 + 15) // 16) * 16
    tb = max(16, min(tb, MAX_TB))
    return tb


def mlp_forward(x, params, *, block_b=512):
    """x: (B, 784) float32. params: f32 dict w1..w4 (in,out layout), b1..b4 shaped (1, N)."""
    B, D = x.shape
    assert D == IN_DIM

    # --- host-side padding / bf16 casts (f32 accumulation inside the kernel) ---
    x_bf16 = jnp.pad(x, ((0, 0), (0, IN_PAD - IN_DIM))).astype(jnp.bfloat16)
    w1 = jnp.pad(params["w1"], ((0, IN_PAD - IN_DIM), (0, 0))).astype(jnp.bfloat16)
    w2 = params["w2"].astype(jnp.bfloat16)
    w3 = jnp.pad(params["w3"], ((0, 0), (0, H3_PAD - H3))).astype(jnp.bfloat16)
    w4 = jnp.pad(params["w4"],
                 ((0, H3_PAD - H3), (0, OUT_PAD - OUT_DIM))).astype(jnp.bfloat16)
    b1, b2 = params["b1"], params["b2"]
    b3 = jnp.pad(params["b3"], ((0, 0), (0, H3_PAD - H3)))
    b4 = jnp.pad(params["b4"], ((0, 0), (0, OUT_PAD - OUT_DIM)))

    # --- batch tiling ---
    tb = _choose_batch_tile(B, block_b)
    b_pad = ((B + tb - 1) // tb) * tb
    if b_pad != B:
        x_bf16 = jnp.pad(x_bf16, ((0, b_pad - B), (0, 0)))
    grid = (b_pad // tb,)

    tiled = lambda shape: pl.BlockSpec(shape, lambda i: (i, 0))      # batch-tiled
    resident = lambda shape: pl.BlockSpec(shape, lambda i: (0, 0))   # VMEM-resident weights

    nbytes = lambda a: a.size * a.dtype.itemsize
    flops = 2 * b_pad * (IN_PAD * H1 + H1 * H2 + H2 * H3_PAD + H3_PAD * OUT_PAD)
    bytes_accessed = (nbytes(x_bf16)
                      + nbytes(w1) + nbytes(w2) + nbytes(w3) + nbytes(w4)
                      + nbytes(b1) + nbytes(b2) + nbytes(b3) + nbytes(b4)
                      + b_pad * OUT_PAD * 4)

    out = pl.pallas_call(
        mlp_kernel,
        out_shape=jax.ShapeDtypeStruct((b_pad, OUT_PAD), jnp.float32),
        grid=grid,
        in_specs=[
            tiled((tb, IN_PAD)),
            resident(w1.shape), resident(b1.shape),
            resident(w2.shape), resident(b2.shape),
            resident(w3.shape), resident(b3.shape),
            resident(w4.shape), resident(b4.shape),
        ],
        out_specs=tiled((tb, OUT_PAD)),
        compiler_params=pltpu.CompilerParams(
            dimension_semantics=("parallel",)),
        cost_estimate=pl.CostEstimate(
            flops=flops, transcendentals=0, bytes_accessed=bytes_accessed),
    )(x_bf16, w1, b1, w2, b2, w3, b3, w4, b4)

    return out[:B, :OUT_DIM]


def init_params(key):
    """Deterministic init mimicking PyTorch nn.Linear defaults (uniform +/- 1/sqrt(fan_in)).

    Weights are stored as (in_features, out_features), i.e. transposed vs nn.Linear,
    so the kernel computes y = x @ W + b.
    """
    dims = [(IN_DIM, H1), (H1, H2), (H2, H3), (H3, OUT_DIM)]
    params = {}
    keys = jax.random.split(key, 2 * len(dims))
    for i, (fan_in, fan_out) in enumerate(dims):
        bound = 1.0 / jnp.sqrt(float(fan_in))
        w = jax.random.uniform(keys[2 * i], (fan_in, fan_out),
                               minval=-bound, maxval=bound, dtype=jnp.float32)
        b = jax.random.uniform(keys[2 * i + 1], (1, fan_out),
                               minval=-bound, maxval=bound, dtype=jnp.float32)
        params[f"w{i + 1}"] = w
        params[f"b{i + 1}"] = b
    return params


def reference_forward(x, params, *, bf16_inputs):
    """Pure-JAX reference. With bf16_inputs=True it mirrors the kernel's dtype flow
    (bf16 matmul inputs, f32 accumulation / bias / ReLU)."""
    if bf16_inputs:
        cast = lambda a: a.astype(jnp.bfloat16).astype(jnp.float32)
    else:
        cast = lambda a: a
    h = cast(x)
    for i in (1, 2, 3):
        h = jnp.maximum(h @ cast(params[f"w{i}"]) + params[f"b{i}"], 0.0)
        h = cast(h)
    return h @ cast(params["w4"]) + params["b4"]


if __name__ == "__main__":
    key = jax.random.PRNGKey(0)
    k_x, k_p = jax.random.split(key)

    B = 8
    # Build input as (B, 1, 28, 28) like MNIST images, then flatten as in forward().
    x_img = jax.random.normal(k_x, (B, 1, 28, 28), dtype=jnp.float32)
    x = x_img.reshape(-1, IN_DIM)

    params = init_params(k_p)

    out = mlp_forward(x, params)
    out = jax.block_until_ready(out)
    assert out.shape == (B, OUT_DIM), out.shape

    # Tight check against a reference with identical bf16 rounding of matmul inputs.
    ref_bf16 = reference_forward(x, params, bf16_inputs=True)
    assert jnp.allclose(out, ref_bf16, atol=2e-3, rtol=2e-3), "mismatch vs bf16-rounded reference"

    # Loose sanity check against the full-f32 reference (bf16 inputs => ~1% error budget).
    ref_f32 = reference_forward(x, params, bf16_inputs=False)
    assert jnp.allclose(out, ref_f32, atol=1e-1, rtol=1e-1), "mismatch vs f32 reference"

    # Exercise the multi-tile / dual-TensorCore grid path (>=2 grid steps) as well.
    B2 = 600
    x2 = jax.random.normal(jax.random.PRNGKey(1), (B2, IN_DIM), dtype=jnp.float32)
    out2 = jax.block_until_ready(mlp_forward(x2, params))
    ref2 = reference_forward(x2, params, bf16_inputs=True)
    assert out2.shape == (B2, OUT_DIM)
    assert jnp.allclose(out2, ref2, atol=2e-3, rtol=2e-3), "mismatch on multi-tile batch"

    print("KERNEL_OK")
</pallas_src>

<mosaic_0001>
module attributes {stable_mosaic.version = 11 : i64} {
  func.func @mlp_kernel(%arg0: i32, %arg1: memref<16x896xbf16, #tpu.memory_space<vmem>>, %arg2: memref<896x512xbf16, #tpu.memory_space<vmem>>, %arg3: memref<1x512xf32, #tpu.memory_space<vmem>>, %arg4: memref<512x256xbf16, #tpu.memory_space<vmem>>, %arg5: memref<1x256xf32, #tpu.memory_space<vmem>>, %arg6: memref<256x128xbf16, #tpu.memory_space<vmem>>, %arg7: memref<1x128xf32, #tpu.memory_space<vmem>>, %arg8: memref<128x128xbf16, #tpu.memory_space<vmem>>, %arg9: memref<1x128xf32, #tpu.memory_space<vmem>>, %arg10: memref<16x128xf32, #tpu.memory_space<vmem>>) attributes {dimension_semantics = [#tpu.dimension_semantics<parallel>], iteration_bounds = array<i64: 1>, scalar_prefetch = 0 : i64, scratch_operands = 0 : i64, tpu.core_type = #tpu.core_type<tc>, window_params = [{transform_indices = @transform_0, window_bounds = array<i64: 16, 896>}, {pipeline_mode = #tpu.pipeline_mode<synchronous>, transform_indices = @transform_1, window_bounds = array<i64: 896, 512>}, {pipeline_mode = #tpu.pipeline_mode<synchronous>, transform_indices = @transform_2, window_bounds = array<i64: 1, 512>}, {pipeline_mode = #tpu.pipeline_mode<synchronous>, transform_indices = @transform_3, window_bounds = array<i64: 512, 256>}, {pipeline_mode = #tpu.pipeline_mode<synchronous>, transform_indices = @transform_4, window_bounds = array<i64: 1, 256>}, {pipeline_mode = #tpu.pipeline_mode<synchronous>, transform_indices = @transform_5, window_bounds = array<i64: 256, 128>}, {pipeline_mode = #tpu.pipeline_mode<synchronous>, transform_indices = @transform_6, window_bounds = array<i64: 1, 128>}, {pipeline_mode = #tpu.pipeline_mode<synchronous>, transform_indices = @transform_7, window_bounds = array<i64: 128, 128>}, {pipeline_mode = #tpu.pipeline_mode<synchronous>, transform_indices = @transform_8, window_bounds = array<i64: 1, 128>}, {transform_indices = @transform_9, window_bounds = array<i64: 16, 128>}]} {
    %c0 = arith.constant 0 : index
    %c0_0 = arith.constant 0 : index
    %0 = vector.load %arg1[%c0, %c0_0] : memref<16x896xbf16, #tpu.memory_space<vmem>>, vector<16x896xbf16>
    %c0_1 = arith.constant 0 : index
    %c0_2 = arith.constant 0 : index
    %1 = vector.load %arg2[%c0_1, %c0_2] : memref<896x512xbf16, #tpu.memory_space<vmem>>, vector<896x512xbf16>
    %cst = arith.constant dense<0.000000e+00> : vector<16x512xf32>
    %2 = tpu.matmul %0, %1, %cst {dimension_numbers = #tpu.dot_dimension_numbers<[1], [0], [0], [1], [0, 0, 1, 1], [], []>} : vector<16x896xbf16>, vector<896x512xbf16>, vector<16x512xf32> -> vector<16x512xf32>
    %c0_3 = arith.constant 0 : index
    %c0_4 = arith.constant 0 : index
    %3 = vector.load %arg3[%c0_3, %c0_4] : memref<1x512xf32, #tpu.memory_space<vmem>>, vector<1x512xf32>
    %4 = vector.broadcast %3 : vector<1x512xf32> to vector<16x512xf32>
    %5 = arith.addf %2, %4 : vector<16x512xf32>
    %cst_5 = arith.constant 0.000000e+00 : f32
    %6 = vector.broadcast %cst_5 : f32 to vector<16x512xf32>
    %7 = arith.maximumf %5, %6 : vector<16x512xf32>
    %8 = arith.truncf %7 : vector<16x512xf32> to vector<16x512xbf16>
    %c0_6 = arith.constant 0 : index
    %c0_7 = arith.constant 0 : index
    %9 = vector.load %arg4[%c0_6, %c0_7] : memref<512x256xbf16, #tpu.memory_space<vmem>>, vector<512x256xbf16>
    %cst_8 = arith.constant dense<0.000000e+00> : vector<16x256xf32>
    %10 = tpu.matmul %8, %9, %cst_8 {dimension_numbers = #tpu.dot_dimension_numbers<[1], [0], [0], [1], [0, 0, 1, 1], [], []>} : vector<16x512xbf16>, vector<512x256xbf16>, vector<16x256xf32> -> vector<16x256xf32>
    %c0_9 = arith.constant 0 : index
    %c0_10 = arith.constant 0 : index
    %11 = vector.load %arg5[%c0_9, %c0_10] : memref<1x256xf32, #tpu.memory_space<vmem>>, vector<1x256xf32>
    %12 = vector.broadcast %11 : vector<1x256xf32> to vector<16x256xf32>
    %13 = arith.addf %10, %12 : vector<16x256xf32>
    %cst_11 = arith.constant 0.000000e+00 : f32
    %14 = vector.broadcast %cst_11 : f32 to vector<16x256xf32>
    %15 = arith.maximumf %13, %14 : vector<16x256xf32>
    %16 = arith.truncf %15 : vector<16x256xf32> to vector<16x256xbf16>
    %c0_12 = arith.constant 0 : index
    %c0_13 = arith.constant 0 : index
    %17 = vector.load %arg6[%c0_12, %c0_13] : memref<256x128xbf16, #tpu.memory_space<vmem>>, vector<256x128xbf16>
    %cst_14 = arith.constant dense<0.000000e+00> : vector<16x128xf32>
    %18 = tpu.matmul %16, %17, %cst_14 {dimension_numbers = #tpu.dot_dimension_numbers<[1], [0], [0], [1], [0, 0, 1, 1], [], []>} : vector<16x256xbf16>, vector<256x128xbf16>, vector<16x128xf32> -> vector<16x128xf32>
    %c0_15 = arith.constant 0 : index
    %c0_16 = arith.constant 0 : index
    %19 = vector.load %arg7[%c0_15, %c0_16] : memref<1x128xf32, #tpu.memory_space<vmem>>, vector<1x128xf32>
    %20 = vector.broadcast %19 : vector<1x128xf32> to vector<16x128xf32>
    %21 = arith.addf %18, %20 : vector<16x128xf32>
    %cst_17 = arith.constant 0.000000e+00 : f32
    %22 = vector.broadcast %cst_17 : f32 to vector<16x128xf32>
    %23 = arith.maximumf %21, %22 : vector<16x128xf32>
    %24 = arith.truncf %23 : vector<16x128xf32> to vector<16x128xbf16>
    %c0_18 = arith.constant 0 : index
    %c0_19 = arith.constant 0 : index
    %25 = vector.load %arg8[%c0_18, %c0_19] : memref<128x128xbf16, #tpu.memory_space<vmem>>, vector<128x128xbf16>
    %cst_20 = arith.constant dense<0.000000e+00> : vector<16x128xf32>
    %26 = tpu.matmul %24, %25, %cst_20 {dimension_numbers = #tpu.dot_dimension_numbers<[1], [0], [0], [1], [0, 0, 1, 1], [], []>} : vector<16x128xbf16>, vector<128x128xbf16>, vector<16x128xf32> -> vector<16x128xf32>
    %c0_21 = arith.constant 0 : index
    %c0_22 = arith.constant 0 : index
    %27 = vector.load %arg9[%c0_21, %c0_22] : memref<1x128xf32, #tpu.memory_space<vmem>>, vector<1x128xf32>
    %28 = vector.broadcast %27 : vector<1x128xf32> to vector<16x128xf32>
    %29 = arith.addf %26, %28 : vector<16x128xf32>
    %c0_23 = arith.constant 0 : index
    %c0_24 = arith.constant 0 : index
    %30 = vector.load %arg10[%c0_23, %c0_24] : memref<16x128xf32, #tpu.memory_space<vmem>>, vector<16x128xf32>
    tpu.vector_store %arg10[%c0_23, %c0_24], %29 {strides = array<i32>} : memref<16x128xf32, #tpu.memory_space<vmem>>, vector<16x128xf32>,
    return
  }
  func.func @transform_0(%arg0: i32) -> (i32, i32) {
    %c0_i32 = arith.constant 0 : i32
    %c0_i32_0 = arith.constant 0 : i32
    return %arg0, %c0_i32 : i32, i32
  }
  func.func @transform_1(%arg0: i32) -> (i32, i32) {
    %c0_i32 = arith.constant 0 : i32
    %c0_i32_0 = arith.constant 0 : i32
    %c0_i32_1 = arith.constant 0 : i32
    return %c0_i32, %c0_i32_0 : i32, i32
  }
  func.func @transform_2(%arg0: i32) -> (i32, i32) {
    %c0_i32 = arith.constant 0 : i32
    %c0_i32_0 = arith.constant 0 : i32
    %c0_i32_1 = arith.constant 0 : i32
    return %c0_i32, %c0_i32_0 : i32, i32
  }
  func.func @transform_3(%arg0: i32) -> (i32, i32) {
    %c0_i32 = arith.constant 0 : i32
    %c0_i32_0 = arith.constant 0 : i32
    %c0_i32_1 = arith.constant 0 : i32
    return %c0_i32, %c0_i32_0 : i32, i32
  }
  func.func @transform_4(%arg0: i32) -> (i32, i32) {
    %c0_i32 = arith.constant 0 : i32
    %c0_i32_0 = arith.constant 0 : i32
    %c0_i32_1 = arith.constant 0 : i32
    return %c0_i32, %c0_i32_0 : i32, i32
  }
  func.func @transform_5(%arg0: i32) -> (i32, i32) {
    %c0_i32 = arith.constant 0 : i32
    %c0_i32_0 = arith.constant 0 : i32
    %c0_i32_1 = arith.constant 0 : i32
    return %c0_i32, %c0_i32_0 : i32, i32
  }
  func.func @transform_6(%arg0: i32) -> (i32, i32) {
    %c0_i32 = arith.constant 0 : i32
    %c0_i32_0 = arith.constant 0 : i32
    %c0_i32_1 = arith.constant 0 : i32
    return %c0_i32, %c0_i32_0 : i32, i32
  }
  func.func @transform_7(%arg0: i32) -> (i32, i32) {
    %c0_i32 = arith.constant 0 : i32
    %c0_i32_0 = arith.constant 0 : i32
    %c0_i32_1 = arith.constant 0 : i32
    return %c0_i32, %c0_i32_0 : i32, i32
  }
  func.func @transform_8(%arg0: i32) -> (i32, i32) {
    %c0_i32 = arith.constant 0 : i32
    %c0_i32_0 = arith.constant 0 : i32
    %c0_i32_1 = arith.constant 0 : i32
    return %c0_i32, %c0_i32_0 : i32, i32
  }
  func.func @transform_9(%arg0: i32) -> (i32, i32) {
    %c0_i32 = arith.constant 0 : i32
    %c0_i32_0 = arith.constant 0 : i32
    return %arg0, %c0_i32 : i32, i32
  }
}

</mosaic_0001>

<bundles_post_ra>
// kernel: tpu_custom_call.1
= control target key start
LH: loop header
LB: loop body
LE: loop exit
PB: predicated region body
PF: predicated region fallthrough
CT: control target
= control target key end

     0   :  { %14 = vsyncpa [#allocation3], 0  ;;  %s4659_s0 = inlined_call_operand.hbm [shape: bf16[16,896], index: 0, kind: input, shape index: {}]   ;;  %s4660_s1 = inlined_call_operand.hbm [shape: bf16[896,512], index: 1, kind: input, shape index: {}]   ;;  %s4661_s2 = inlined_call_operand.hbm [shape: f32[1,512], index: 2, kind: input, shape index: {}]   ;;  %s4662_s3 = inlined_call_operand.hbm [shape: bf16[512,256], index: 3, kind: input, shape index: {}]   ;;  %s4663_s4 = inlined_call_operand.vmem [shape: f32[1,256], index: 4, kind: input, shape index: {}]   ;;  %s4664_s5 = inlined_call_operand.hbm [shape: bf16[256,128], index: 5, kind: input, shape index: {}]   ;;  %s4665_s6 = inlined_call_operand.vmem [shape: f32[1,128], index: 6, kind: input, shape index: {}]   ;;  %s4666_s7 = inlined_call_operand.hbm [shape: bf16[128,128], index: 7, kind: input, shape index: {}]   ;;  %s4667_s8 = inlined_call_operand.vmem [shape: f32[1,128], index: 8, kind: input, shape index: {}]   ;;  %s4668_s9 = inlined_call_operand.hbm [shape: f32[16,128], index: 9, kind: output, shape index: {}]  }
   0x1   :  { %15 = vsyncpa [#allocation6], 0 }
   0x2   :  { %16 = vsyncpa [#allocation9], 0 }
   0x3   :  { %17 = vsyncpa [#allocation12], 0  ;;  %s36_s11 = sshll.u32 %s4660_s1, 4  ;;  %s37_s11 = int_to_ptr.hbm [resolvable:$true] %s36_s11 }
   0x4   :  { %18 = vsyncpa [#allocation4], 0  ;;  %s4494_s12 = smov [#allocation5]   ;;  %s60_s16 = sshll.u32 %s4662_s3, 4  ;;  %s61_s16 = int_to_ptr.hbm [resolvable:$true] %s60_s16 }
   0x5   :  { %s38_s13 = sshll.u32 %s4494_s12, 4  ;;  %s4495_s17 = smov 256   ;;  %s39_s13 = int_to_ptr.vmem [resolvable:$true] %s38_s13 }
   0x6   :  { %s4496_s18 = smov 16   ;;  %s4497_s19 = smov [#allocation8]  }
   0x7   :  { %44 = dma.hbm_to_vmem [thread:$0]  %s37_s11, 28672, %s39_s13, [#allocation6], %s4495_s17, %s4495_s17, %s4496_s18  }
   0x8   :  { %s62_s20 = sshll.u32 %s4497_s19, 4  ;;  %s4498_s21 = smov 128   ;;  %s63_s20 = int_to_ptr.vmem [resolvable:$true] %s62_s20 }
   0x9   :  { %s4499_s22 = smov 8   ;;  %s23_s24 = sshll.u32 %s4659_s0, 4  ;;  %s24_s24 = int_to_ptr.hbm [resolvable:$true] %s23_s24 }
   0xa   :  { %68 = dma.hbm_to_vmem [thread:$0]  %s61_s16, 8192, %s63_s20, [#allocation9], %s4498_s21, %s4498_s21, %s4499_s22  }
   0xb   :  { %s4500_s25 = smov [#allocation2]   ;;  %s50_s28 = sshll.u32 %s4661_s2, 4  ;;  %s51_s28 = int_to_ptr.hbm [resolvable:$true] %s50_s28 }
   0xc   :  { %s25_s3 = sshll.u32 %s4500_s25, 4  ;;  %s4501_s29 = smov 448   ;;  %s26_s3 = int_to_ptr.vmem [resolvable:$true] %s25_s3 }
   0xd   :  { %s4502_s30 = smov 28   ;;  %s4503_s10 = smov [#allocation7]  }
   0xe   :  { %31 = dma.hbm_to_vmem [thread:$0]  %s24_s24, 896, %s26_s3, [#allocation3], %s4501_s29, %s4501_s29, %s4502_s30  }
   0xf   :  { %s52_s11 = sshll.u32 %s4503_s10, 4  ;;  %s75_s14 = sshll.u32 %s4664_s5, 4  ;;  %s53_s11 = int_to_ptr.vmem [resolvable:$true] %s52_s11  ;;  %s76_s14 = int_to_ptr.hbm [resolvable:$true] %s75_s14 }
  0x10   :  { %55 = dma.hbm_to_vmem [thread:$0]  %s51_s28, 64, %s53_s11, [#allocation6]  }
  0x11   :  { %s4504_s0 = smov [#allocation10]   ;;  %s90_s2 = sshll.u32 %s4666_s7, 4  ;;  %s91_s2 = int_to_ptr.hbm [resolvable:$true] %s90_s2 }
  0x12   :  { %s77_s15 = sshll.u32 %s4504_s0, 4  ;;  %s4505_s18 = smov 64   ;;  %s78_s15 = int_to_ptr.vmem [resolvable:$true] %s77_s15 }
  0x13   :  { %s4506_s19 = smov 4   ;;  %s4507_s20 = smov [#allocation11]  }
  0x14   :  { %83 = dma.hbm_to_vmem [thread:$0]  %s76_s14, 2048, %s78_s15, [#allocation9], %s4505_s18, %s4505_s18, %s4506_s19  }
  0x15   :  { %s92_s1 = sshll.u32 %s4507_s20, 4  ;;  %s93_s1 = int_to_ptr.vmem [resolvable:$true] %s92_s1 }
  0x16   :  { %98 = dma.hbm_to_vmem [thread:$0]  %s91_s2, 1024, %s93_s1, [#allocation12], %s4505_s18, %s4505_s18, %s4506_s19  }
  0x17   :  { %4484 = dma.done.wait [#allocation3], 896  }
  0x18   :  { %4485 = vsyncadd [#allocation3], 4294966400 }
  0x19   :  { %4486 = dma.done.wait [#allocation6], 28736  }
  0x1a   :  { %4487 = vsyncadd [#allocation6], 4294938560 }
  0x1b   :  { %4488 = dma.done.wait [#allocation9], 10240  }
  0x1c   :  { %4489 = vsyncadd [#allocation9], 4294957056 }
  0x1d   :  { %4490 = dma.done.wait [#allocation12], 1024  }
  0x1e   :  { %4491 = vsyncadd [#allocation12], 4294966272  ;;  %v2846_v0 = vld [vmem:[#allocation5 + $0xe0] sm:$0xf]  ;;  %v4017_v1 = vld [vmem:[#allocation5 + $0xec] sm:$0xf0] }
  0x1f   :  { %v2974_v2 = vld [vmem:[#allocation5 + $0x1e0] sm:$0xf]  ;;  %v2847_v3 = vor.u32 %v4017_v1, %v2846_v0  ;;  %v4049_v4 = vld [vmem:[#allocation5 + $0x1ec] sm:$0xf0]  ;;  %s4508_s3 = smov [#allocation13]   ;;  %s2688_s28 = sshll.u32 %s4668_s9, 4  ;;  %s2689_s28 = int_to_ptr.hbm [resolvable:$true] %s2688_s28 }
  0x20   :  { %v3102_v5 = vld [vmem:[#allocation5 + $0x2e0] sm:$0xf]  ;;  %v4081_v6 = vld [vmem:[#allocation5 + $0x2ec] sm:$0xf0]  ;;  %v2975_v7 = vor.u32 %v4049_v4, %v2974_v2  ;;  %s2686_s26 = sshll.u32 %s4508_s3, 4  ;;  %s2687_s26 = int_to_ptr.vmem [resolvable:$true] %s2686_s26 }
  0x21   :  { %v3103_v8 = vor.u32 %v4081_v6, %v3102_v5  ;;  %v3230_v9 = vld [vmem:[#allocation5 + $0x3e0] sm:$0xf]  ;;  %v4113_v10 = vld [vmem:[#allocation5 + $0x3ec] sm:$0xf0]  ;;  %1523 = vmatpush.bf16.msra.mxu0 %v2847_v3 }
  0x22   :  { %v2830_v11 = vld [vmem:[#allocation5 + $0xc0] sm:$0xf]  ;;  %v3231_v12 = vor.u32 %v4113_v10, %v3230_v9  ;;  %v4013_v13 = vld [vmem:[#allocation5 + $0xcc] sm:$0xf0]  ;;  %1537 = vmatpush.bf16.msra.mxu1 %v2975_v7 }
  0x23   :  { %v2958_v14 = vld [vmem:[#allocation5 + $0x1c0] sm:$0xf]  ;;  %v4045_v15 = vld [vmem:[#allocation5 + $0x1cc] sm:$0xf0]  ;;  %1551 = vmatpush.bf16.msra.mxu2 %v3103_v8  ;;  %v2831_v16 = vor.u32 %v4013_v13, %v2830_v11 }
  0x24   :  { %v2959_v17 = vor.u32 %v4045_v15, %v2958_v14  ;;  %v3086_v18 = vld [vmem:[#allocation5 + $0x2c0] sm:$0xf]  ;;  %v4077_v19 = vld [vmem:[#allocation5 + $0x2cc] sm:$0xf0]  ;;  %1565 = vmatpush.bf16.msra.mxu3 %v3231_v12 }
  0x25   :  { %v3214_v20 = vld [vmem:[#allocation5 + $0x3c0] sm:$0xf]  ;;  %v3087_v21 = vor.u32 %v4077_v19, %v3086_v18  ;;  %v4109_v22 = vld [vmem:[#allocation5 + $0x3cc] sm:$0xf0]  ;;  %1524 = vmatpush.bf16.msra.mxu0 %v2831_v16 }
  0x26   :  { %v2814_v23 = vld [vmem:[#allocation5 + $0xa0] sm:$0xf]  ;;  %v4009_v24 = vld [vmem:[#allocation5 + $0xac] sm:$0xf0]  ;;  %v3215_v25 = vor.u32 %v4109_v22, %v3214_v20  ;;  %1538 = vmatpush.bf16.msra.mxu1 %v2959_v17 }
  0x27   :  { %v2942_v26 = vld [vmem:[#allocation5 + $0x1a0] sm:$0xf]  ;;  %v4041_v27 = vld [vmem:[#allocation5 + $0x1ac] sm:$0xf0]  ;;  %v2815_v29 = vor.u32 %v4009_v24, %v2814_v23  ;;  %1552 = vmatpush.bf16.msra.mxu2 %v3087_v21 }
  0x28   :  { %v3070_v28 = vld [vmem:[#allocation5 + $0x2a0] sm:$0xf]  ;;  %v4073_v30 = vld [vmem:[#allocation5 + $0x2ac] sm:$0xf0]  ;;  %v2943_v33 = vor.u32 %v4041_v27, %v2942_v26  ;;  %1566 = vmatpush.bf16.msra.mxu3 %v3215_v25 }
  0x29   :  { %v3198_v31 = vld [vmem:[#allocation5 + $0x3a0] sm:$0xf]  ;;  %v4105_v32 = vld [vmem:[#allocation5 + $0x3ac] sm:$0xf0]  ;;  %v3071_v34 = vor.u32 %v4073_v30, %v3070_v28  ;;  %1525 = vmatpush.bf16.msra.mxu0 %v2815_v29 }
  0x2a   :  { %v2798_v35 = vld [vmem:[#allocation5 + $0x80] sm:$0xf]  ;;  %v4005_v36 = vld [vmem:[#allocation5 + $0x8c] sm:$0xf0]  ;;  %v3199_v38 = vor.u32 %v4105_v32, %v3198_v31  ;;  %1539 = vmatpush.bf16.msra.mxu1 %v2943_v33 }
  0x2b   :  { %v2926_v37 = vld [vmem:[#allocation5 + $0x180] sm:$0xf]  ;;  %v4037_v39 = vld [vmem:[#allocation5 + $0x18c] sm:$0xf0]  ;;  %v2799_v44 = vor.u32 %v4005_v36, %v2798_v35  ;;  %1553 = vmatpush.bf16.msra.mxu2 %v3071_v34 }
  0x2c   :  { %v3054_v40 = vld [vmem:[#allocation5 + $0x280] sm:$0xf]  ;;  %v4069_v41 = vld [vmem:[#allocation5 + $0x28c] sm:$0xf0]  ;;  %v2927_v45 = vor.u32 %v4037_v39, %v2926_v37  ;;  %1567 = vmatpush.bf16.msra.mxu3 %v3199_v38  ;;  %v4015_v37 = vld [vmem:[#allocation5 + $0xe4] sm:$0xf] }
  0x2d   :  { %v3182_v42 = vld [vmem:[#allocation5 + $0x380] sm:$0xf]  ;;  %v4101_v43 = vld [vmem:[#allocation5 + $0x38c] sm:$0xf0]  ;;  %v3055_v46 = vor.u32 %v4069_v41, %v3054_v40  ;;  %1526 = vmatpush.bf16.msra.mxu0 %v2799_v44  ;;  %v2848_v38 = vld [vmem:[#allocation5 + $0xf0] sm:$0xf0] }
  0x2e   :  { %v2782_v47 = vld [vmem:[#allocation5 + $0x60] sm:$0xf]  ;;  %v4001_v48 = vld [vmem:[#allocation5 + $0x6c] sm:$0xf0]  ;;  %v3183_v50 = vor.u32 %v4101_v43, %v3182_v42  ;;  %1540 = vmatpush.bf16.msra.mxu1 %v2927_v45 }
  0x2f   :  { %v2910_v49 = vld [vmem:[#allocation5 + $0x160] sm:$0xf]  ;;  %v4033_v51 = vld [vmem:[#allocation5 + $0x16c] sm:$0xf0]  ;;  %v2783_v56 = vor.u32 %v4001_v48, %v2782_v47  ;;  %1554 = vmatpush.bf16.msra.mxu2 %v3055_v46  ;;  %v2851_v48 = vor.u32 %v4015_v37, %v2848_v38 }
  0x30   :  { %v3038_v52 = vld [vmem:[#allocation5 + $0x260] sm:$0xf]  ;;  %v4065_v53 = vld [vmem:[#allocation5 + $0x26c] sm:$0xf0]  ;;  %v2911_v57 = vor.u32 %v4033_v51, %v2910_v49  ;;  %1568 = vmatpush.bf16.msra.mxu3 %v3183_v50  ;;  %v4011_v50 = vld [vmem:[#allocation5 + $0xc4] sm:$0xf] }
  0x31   :  { %v3166_v54 = vld [vmem:[#allocation5 + $0x360] sm:$0xf]  ;;  %v4097_v55 = vld [vmem:[#allocation5 + $0x36c] sm:$0xf0]  ;;  %v3039_v58 = vor.u32 %v4065_v53, %v3038_v52  ;;  %1527 = vmatpush.bf16.msra.mxu0 %v2783_v56  ;;  %v2832_v51 = vld [vmem:[#allocation5 + $0xd0] sm:$0xf0] }
  0x32   :  { %v2766_v59 = vld [vmem:[#allocation5 + $0x40] sm:$0xf]  ;;  %v3997_v60 = vld [vmem:[#allocation5 + $0x4c] sm:$0xf0]  ;;  %v3167_v62 = vor.u32 %v4097_v55, %v3166_v54  ;;  %1541 = vmatpush.bf16.msra.mxu1 %v2911_v57  ;;  %v2706_v52 = vld [vmem:[#allocation2] sm:$0xf] }
  0x33   :  { %v2894_v61 = vld [vmem:[#allocation5 + $0x140] sm:$0xf]  ;;  %v4029_v63 = vld [vmem:[#allocation5 + $0x14c] sm:$0xf0]  ;;  %v2767_v4 = vor.u32 %v3997_v60, %v2766_v59  ;;  %1555 = vmatpush.bf16.msra.mxu2 %v3039_v58  ;;  %v3983_v53 = vld [vmem:[#allocation2 + $0x18] sm:$0xf0] }
  0x34   :  { %v3022_v0 = vld [vmem:[#allocation5 + $0x240] sm:$0xf]  ;;  %v4061_v1 = vld [vmem:[#allocation5 + $0x24c] sm:$0xf0]  ;;  %v2895_v5 = vor.u32 %v4029_v63, %v2894_v61  ;;  %1569 = vmatpush.bf16.msra.mxu3 %v3167_v62  ;;  %v4580_v57 = vor.u32 %v3983_v53, %v2706_v52  ;;  %v3984_v58 = vld [vmem:[#allocation2 + $0x20] sm:$0xf0] }
  0x35   :  { %v3150_v2 = vld [vmem:[#allocation5 + $0x340] sm:$0xf]  ;;  %v4093_v3 = vld [vmem:[#allocation5 + $0x34c] sm:$0xf0]  ;;  %v3023_v6 = vor.u32 %v4061_v1, %v3022_v0  ;;  %1528 = vmatpush.bf16.msra.mxu0 %v2767_v4  ;;  %v2835_v1 = vor.u32 %v4011_v50, %v2832_v51  ;;  %v4007_v4 = vld [vmem:[#allocation5 + $0xa4] sm:$0xf] }
  0x36   :  { %v2750_v7 = vld [vmem:[#allocation5 + $0x20] sm:$0xf]  ;;  %v3993_v8 = vld [vmem:[#allocation5 + $0x2c] sm:$0xf0]  ;;  %v3151_v10 = vor.u32 %v4093_v3, %v3150_v2  ;;  %1542 = vmatpush.bf16.msra.mxu1 %v2895_v5  ;;  %v2816_v5 = vld [vmem:[#allocation5 + $0xb0] sm:$0xf0] }
  0x37   :  { %v2878_v9 = vld [vmem:[#allocation5 + $0x120] sm:$0xf]  ;;  %v4025_v11 = vld [vmem:[#allocation5 + $0x12c] sm:$0xf0]  ;;  %v2751_v16 = vor.u32 %v3993_v8, %v2750_v7  ;;  %1556 = vmatpush.bf16.msra.mxu2 %v3023_v6  ;;  %v3980_v6 = vld [vmem:[#allocation2 + $0x4] sm:$0xf] }
  0x38   :  { %v3006_v12 = vld [vmem:[#allocation5 + $0x220] sm:$0xf]  ;;  %v4057_v13 = vld [vmem:[#allocation5 + $0x22c] sm:$0xf0]  ;;  %v2879_v19 = vor.u32 %v4025_v11, %v2878_v9  ;;  %1570 = vmatpush.bf16.msra.mxu3 %v3151_v10  ;;  %v2708_v7 = vld [vmem:[#allocation2 + $0x1c] sm:$0xf0] }
  0x39   :  { %v3134_v14 = vld [vmem:[#allocation5 + $0x320] sm:$0xf]  ;;  %v4089_v15 = vld [vmem:[#allocation5 + $0x32c] sm:$0xf0]  ;;  %v3007_v20 = vor.u32 %v4057_v13, %v3006_v12  ;;  %1529 = vmatpush.bf16.msra.mxu0 %v2751_v16  ;;  %v4586_v11 = vor.u32 %v3980_v6, %v2708_v7  ;;  %v3987_v7 = vld [vmem:[#allocation5 + $0x4] sm:$0xf] }
  0x3a   :  { %v2734_v17 = vld [vmem:[#allocation5] sm:$0xf]  ;;  %v3989_v18 = vld [vmem:[#allocation5 + $0xc] sm:$0xf0]  ;;  %v3135_v24 = vor.u32 %v4089_v15, %v3134_v14  ;;  %1543 = vmatpush.bf16.msra.mxu1 %v2879_v19  ;;  %v3981_v19 = vld [vmem:[#allocation2 + $0xc] sm:$0xf] }
  0x3b   :  { %v2862_v21 = vld [vmem:[#allocation5 + $0x100] sm:$0xf]  ;;  %v4021_v22 = vld [vmem:[#allocation5 + $0x10c] sm:$0xf0]  ;;  %v2735_v31 = vor.u32 %v3989_v18, %v2734_v17  ;;  %1557 = vmatpush.bf16.msra.mxu2 %v3007_v20  ;;  %v2819_v17 = vor.u32 %v4007_v4, %v2816_v5 }
  0x3c   :  { %v2990_v23 = vld [vmem:[#allocation5 + $0x200] sm:$0xf]  ;;  %v4053_v25 = vld [vmem:[#allocation5 + $0x20c] sm:$0xf0]  ;;  %v2863_v35 = vor.u32 %v4021_v22, %v2862_v21  ;;  %1571 = vmatpush.bf16.msra.mxu3 %v3135_v24  ;;  %v4003_v21 = vld [vmem:[#allocation5 + $0x84] sm:$0xf] }
  0x3d   :  { %v3118_v26 = vld [vmem:[#allocation5 + $0x300] sm:$0xf]  ;;  %v4085_v27 = vld [vmem:[#allocation5 + $0x30c] sm:$0xf0]  ;;  %v2991_v36 = vor.u32 %v4053_v25, %v2990_v23  ;;  %1530 = vmatpush.bf16.msra.mxu0 %v2735_v31  ;;  %v2800_v22 = vld [vmem:[#allocation5 + $0x90] sm:$0xf0] }
  0x3e   :  { %v3358_v28 = vld [vmem:[#allocation5 + $0x4e0] sm:$0xf]  ;;  %v4145_v29 = vld [vmem:[#allocation5 + $0x4ec] sm:$0xf0]  ;;  %v3119_v39 = vor.u32 %v4085_v27, %v3118_v26  ;;  %1544 = vmatpush.bf16.msra.mxu1 %v2863_v35  ;;  %v2784_v35 = vld [vmem:[#allocation5 + $0x70] sm:$0xf0] }
  0x3f   :  { %v3486_v30 = vld [vmem:[#allocation5 + $0x5e0] sm:$0xf]  ;;  %v4177_v32 = vld [vmem:[#allocation5 + $0x5ec] sm:$0xf0]  ;;  %v3359_v40 = vor.u32 %v4145_v29, %v3358_v28  ;;  %1558 = vmatpush.bf16.msra.mxu2 %v2991_v36 }
  0x40   :  { %v3614_v33 = vld [vmem:[#allocation5 + $0x6e0] sm:$0xf]  ;;  %v4209_v34 = vld [vmem:[#allocation5 + $0x6ec] sm:$0xf0]  ;;  %v3487_v43 = vor.u32 %v4177_v32, %v3486_v30  ;;  %1572 = vmatpush.bf16.msra.mxu3 %v3119_v39  ;;  %1531 = vmatmul.bf16.vlgmr.msra.gmra.mxu0 %v4580_v57  ;;  %v2803_v30 = vor.u32 %v4003_v21, %v2800_v22  ;;  %v2722_v22 = vld [vmem:[#allocation2 + $0x10] sm:$0xf] }
  0x41   :  { %v3342_v41 = vld [vmem:[#allocation5 + $0x4c0] sm:$0xf]  ;;  %v4141_v42 = vld [vmem:[#allocation5 + $0x4cc] sm:$0xf0]  ;;  %v3615_v44 = vor.u32 %v4209_v34, %v3614_v33  ;;  %1579 = vmatpush.bf16.msrb.mxu0 %v3359_v40  ;;  %1545 = vmatmul.bf16.vlgmr.msra.gmra.mxu1 %v4586_v11  ;;  %v3999_v34 = vld [vmem:[#allocation5 + $0x64] sm:$0xf] }
  0x42   :  { %v3470_v45 = vld [vmem:[#allocation5 + $0x5c0] sm:$0xf]  ;;  %v4173_v46 = vld [vmem:[#allocation5 + $0x5cc] sm:$0xf0]  ;;  %v3343_v55 = vor.u32 %v4141_v42, %v3342_v41  ;;  %1593 = vmatpush.bf16.msrb.mxu1 %v3487_v43  ;;  %v2787_v42 = vor.u32 %v3999_v34, %v2784_v35  ;;  %v2960_v34 = vld [vmem:[#allocation5 + $0x1d0] sm:$0xf0] }
  0x43   :  { %v3598_v47 = vld [vmem:[#allocation5 + $0x6c0] sm:$0xf]  ;;  %v4205_v49 = vld [vmem:[#allocation5 + $0x6cc] sm:$0xf0]  ;;  %1607 = vmatpush.bf16.msrb.mxu2 %v3615_v44  ;;  %v3471_v59 = vor.u32 %v4173_v46, %v3470_v45  ;;  %v3995_v46 = vld [vmem:[#allocation5 + $0x44] sm:$0xf] }
  0x44   :  { %v2714_v54 = vld [vmem:[#allocation2 + $0x8] sm:$0xf]  ;;  %v3326_v56 = vld [vmem:[#allocation5 + $0x4a0] sm:$0xf]  ;;  %v3599_v60 = vor.u32 %v4205_v49, %v3598_v47  ;;  %1621 = vmatpush.bf16.msrb.mxu3 %v2851_v48  ;;  %v2768_v47 = vld [vmem:[#allocation5 + $0x50] sm:$0xf0] }
  0x45   :  { %v4137_v61 = vld [vmem:[#allocation5 + $0x4ac] sm:$0xf0]  ;;  %v3454_v62 = vld [vmem:[#allocation5 + $0x5a0] sm:$0xf]  ;;  %v4582_v0 = vor.u32 %v3984_v58, %v2714_v54  ;;  %1580 = vmatpush.bf16.msrb.mxu0 %v3343_v55  ;;  %v2771_v54 = vor.u32 %v3995_v46, %v2768_v47  ;;  %v4075_v35 = vld [vmem:[#allocation5 + $0x2c4] sm:$0xf] }
  0x46   :  { %v4169_v63 = vld [vmem:[#allocation5 + $0x5ac] sm:$0xf0]  ;;  %v3582_v2 = vld [vmem:[#allocation5 + $0x6a0] sm:$0xf]  ;;  %v3327_v8 = vor.u32 %v4137_v61, %v3326_v56  ;;  %1594 = vmatpush.bf16.msrb.mxu1 %v3471_v59  ;;  %v3991_v59 = vld [vmem:[#allocation5 + $0x24] sm:$0xf] }
  0x47   :  { %v4201_v3 = vld [vmem:[#allocation5 + $0x6ac] sm:$0xf0]  ;;  %1559 = vmatmul.bf16.vlgmr.msra.gmra.mxu2 %v4582_v0  ;;  %v3310_v9 = vld [vmem:[#allocation5 + $0x480] sm:$0xf]  ;;  %v3455_v12 = vor.u32 %v4169_v63, %v3454_v62 }
  0x48   :  { %v4133_v10 = vld [vmem:[#allocation5 + $0x48c] sm:$0xf0]  ;;  %1608 = vmatpush.bf16.msrb.mxu2 %v3599_v60  ;;  %v3583_v13 = vor.u32 %v4201_v3, %v3582_v2  ;;  %v3438_v14 = vld [vmem:[#allocation5 + $0x580] sm:$0xf]  ;;  %1622 = vmatpush.bf16.msrb.mxu3 %v2835_v1  ;;  %v2752_v60 = vld [vmem:[#allocation5 + $0x30] sm:$0xf0] }
  0x49   :  { %v4165_v15 = vld [vmem:[#allocation5 + $0x58c] sm:$0xf0]  ;;  %v3566_v16 = vld [vmem:[#allocation5 + $0x680] sm:$0xf]  ;;  %1581 = vmatpush.bf16.msrb.mxu0 %v3327_v8  ;;  %v3311_v24 = vor.u32 %v4133_v10, %v3310_v9  ;;  %v2755_v8 = vor.u32 %v3991_v59, %v2752_v60  ;;  %v2736_v9 = vld [vmem:[#allocation5 + $0x10] sm:$0xf0] }
  0x4a   :  { %v4197_v18 = vld [vmem:[#allocation5 + $0x68c] sm:$0xf0]  ;;  %1595 = vmatpush.bf16.msrb.mxu1 %v3455_v12  ;;  %v3439_v25 = vor.u32 %v4165_v15, %v3438_v14  ;;  %v3294_v27 = vld [vmem:[#allocation5 + $0x460] sm:$0xf]  ;;  %v4047_v10 = vld [vmem:[#allocation5 + $0x1e4] sm:$0xf] }
  0x4b   :  { %v2716_v20 = vld [vmem:[#allocation2 + $0x24] sm:$0xf0]  ;;  %v3567_v26 = vor.u32 %v4197_v18, %v3566_v16  ;;  %v3422_v29 = vld [vmem:[#allocation5 + $0x560] sm:$0xf]  ;;  %v2976_v12 = vld [vmem:[#allocation5 + $0x1f0] sm:$0xf0] }
  0x4c   :  { %v4589_v23 = vor.u32 %v3981_v19, %v2716_v20  ;;  %1609 = vmatpush.bf16.msrb.mxu2 %v3583_v13  ;;  %v4129_v28 = vld [vmem:[#allocation5 + $0x46c] sm:$0xf0]  ;;  %1623 = vmatpush.bf16.msrb.mxu3 %v2819_v17  ;;  %v3550_v32 = vld [vmem:[#allocation5 + $0x660] sm:$0xf]  ;;  %v4079_v13 = vld [vmem:[#allocation5 + $0x2e4] sm:$0xf] }
  0x4d   :  { %v4161_v31 = vld [vmem:[#allocation5 + $0x56c] sm:$0xf0]  ;;  %1582 = vmatpush.bf16.msrb.mxu0 %v3311_v24  ;;  %v3295_v36 = vor.u32 %v4129_v28, %v3294_v27  ;;  %v3278_v39 = vld [vmem:[#allocation5 + $0x440] sm:$0xf]  ;;  %v3104_v14 = vld [vmem:[#allocation5 + $0x2f0] sm:$0xf0]  ;;  %v2979_v27 = vor.u32 %v4047_v10, %v2976_v12 }
  0x4e   :  { %v4193_v33 = vld [vmem:[#allocation5 + $0x66c] sm:$0xf0]  ;;  %1573 = vmatmul.bf16.vlgmr.msra.gmra.mxu3 %v4589_v23  ;;  %1596 = vmatpush.bf16.msrb.mxu1 %v3439_v25  ;;  %v3423_v37 = vor.u32 %v4161_v31, %v3422_v29  ;;  %v3406_v41 = vld [vmem:[#allocation5 + $0x540] sm:$0xf]  ;;  %v4111_v15 = vld [vmem:[#allocation5 + $0x3e4] sm:$0xf]  ;;  %v3107_v31 = vor.u32 %v4079_v13, %v3104_v14 }
  0x4f   :  { %v3551_v38 = vor.u32 %v4193_v33, %v3550_v32  ;;  %v4125_v40 = vld [vmem:[#allocation5 + $0x44c] sm:$0xf0]  ;;  %v3534_v44 = vld [vmem:[#allocation5 + $0x640] sm:$0xf]  ;;  %v3232_v17 = vld [vmem:[#allocation5 + $0x3f0] sm:$0xf0] }
  0x50   :  { %1610 = vmatpush.bf16.msrb.mxu2 %v3567_v26  ;;  %1624 = vmatpush.bf16.msrb.mxu3 %v2803_v30  ;;  %v4157_v43 = vld [vmem:[#allocation5 + $0x54c] sm:$0xf0]  ;;  %v3279_v48 = vor.u32 %v4125_v40, %v3278_v39  ;;  %v3262_v51 = vld [vmem:[#allocation5 + $0x420] sm:$0xf]  ;;  %v4143_v18 = vld [vmem:[#allocation5 + $0x4e4] sm:$0xf]  ;;  %v2739_v26 = vor.u32 %v3987_v7, %v2736_v9  ;;  %v3235_v32 = vor.u32 %v4111_v15, %v3232_v17 }
  0x51   :  { %v4189_v45 = vld [vmem:[#allocation5 + $0x64c] sm:$0xf0]  ;;  %1583 = vmatpush.bf16.msrb.mxu0 %v3295_v36  ;;  %v3407_v49 = vor.u32 %v4157_v43, %v3406_v41  ;;  %v3390_v53 = vld [vmem:[#allocation5 + $0x520] sm:$0xf]  ;;  %v3360_v19 = vld [vmem:[#allocation5 + $0x4f0] sm:$0xf0] }
  0x52   :  { %1597 = vmatpush.bf16.msrb.mxu1 %v3423_v37  ;;  %v3535_v50 = vor.u32 %v4189_v45, %v3534_v44  ;;  %v4121_v52 = vld [vmem:[#allocation5 + $0x42c] sm:$0xf0]  ;;  %v3518_v56 = vld [vmem:[#allocation5 + $0x620] sm:$0xf]  ;;  %v3985_v24 = vld [vmem:[#allocation2 + $0x28] sm:$0xf0]  ;;  %v3363_v36 = vor.u32 %v4143_v18, %v3360_v19 }
  0x53   :  { %v4153_v55 = vld [vmem:[#allocation5 + $0x52c] sm:$0xf0]  ;;  %v3246_v61 = vld [vmem:[#allocation5 + $0x400] sm:$0xf]  ;;  %v3263_v62 = vor.u32 %v4121_v52, %v3262_v51  ;;  %v3986_v28 = vld [vmem:[#allocation2 + $0x30] sm:$0xf0]  ;;  %v4592_v37 = vor.u32 %v3985_v24, %v2722_v22 }
  0x54   :  { %1611 = vmatpush.bf16.msrb.mxu2 %v3551_v38  ;;  %1625 = vmatpush.bf16.msrb.mxu3 %v2787_v42  ;;  %v4185_v58 = vld [vmem:[#allocation5 + $0x62c] sm:$0xf0]  ;;  %v3374_v1 = vld [vmem:[#allocation5 + $0x500] sm:$0xf]  ;;  %v3391_v3 = vor.u32 %v4153_v55, %v3390_v53  ;;  %v3982_v29 = vld [vmem:[#allocation2 + $0x14] sm:$0xf] }
  0x55   :  { %1584 = vmatpush.bf16.msrb.mxu0 %v3279_v48  ;;  %v4117_v63 = vld [vmem:[#allocation5 + $0x40c] sm:$0xf0]  ;;  %v3519_v4 = vor.u32 %v4185_v58, %v3518_v56  ;;  %v3502_v5 = vld [vmem:[#allocation5 + $0x600] sm:$0xf]  ;;  %v2724_v30 = vld [vmem:[#allocation2 + $0x2c] sm:$0xf0] }
  0x56   :  { %v4149_v2 = vld [vmem:[#allocation5 + $0x50c] sm:$0xf0]  ;;  %1598 = vmatpush.bf16.msrb.mxu1 %v3407_v49  ;;  %v3247_v16 = vor.u32 %v4117_v63, %v3246_v61  ;;  %v2730_v25 = vld [vmem:[#allocation2 + $0x18] sm:$0xf]  ;;  %v4043_v33 = vld [vmem:[#allocation5 + $0x1c4] sm:$0xf]  ;;  %v4596_v42 = vor.u32 %v3982_v29, %v2724_v30 }
  0x57   :  { %v4181_v6 = vld [vmem:[#allocation5 + $0x60c] sm:$0xf0]  ;;  %v3375_v20 = vor.u32 %v4149_v2, %v3374_v1  ;;  %v3088_v38 = vld [vmem:[#allocation5 + $0x2d0] sm:$0xf0]  ;;  %v4107_v39 = vld [vmem:[#allocation5 + $0x3c4] sm:$0xf]  ;;  %v4594_v41 = vor.u32 %v3986_v28, %v2730_v25  ;;  %v2963_v45 = vor.u32 %v4043_v33, %v2960_v34 }
  0x58   :  { %1612 = vmatpush.bf16.msrb.mxu2 %v3535_v50  ;;  %1626 = vmatpush.bf16.msrb.mxu3 %v2771_v54  ;;  %v3503_v21 = vor.u32 %v4181_v6, %v3502_v5  ;;  %v3216_v40 = vld [vmem:[#allocation5 + $0x3d0] sm:$0xf0]  ;;  %v4139_v43 = vld [vmem:[#allocation5 + $0x4c4] sm:$0xf]  ;;  %v3091_v46 = vor.u32 %v4075_v35, %v3088_v38 }
  0x59   :  { %1585 = vmatpush.bf16.msrb.mxu0 %v3263_v62  ;;  %v3344_v44 = vld [vmem:[#allocation5 + $0x4d0] sm:$0xf0]  ;;  %v3219_v47 = vor.u32 %v4107_v39, %v3216_v40  ;;  %v4039_v48 = vld [vmem:[#allocation5 + $0x1a4] sm:$0xf] }
  0x5a   :  { %1599 = vmatpush.bf16.msrb.mxu1 %v3391_v3  ;;  %v2944_v49 = vld [vmem:[#allocation5 + $0x1b0] sm:$0xf0]  ;;  %v4071_v50 = vld [vmem:[#allocation5 + $0x2a4] sm:$0xf]  ;;  %v3347_v51 = vor.u32 %v4139_v43, %v3344_v44 }
  0x5b   :  { %v3072_v52 = vld [vmem:[#allocation5 + $0x2b0] sm:$0xf0]  ;;  %v4103_v53 = vld [vmem:[#allocation5 + $0x3a4] sm:$0xf]  ;;  %v2947_v58 = vor.u32 %v4039_v48, %v2944_v49 }
  0x5c   :  { %1613 = vmatpush.bf16.msrb.mxu2 %v3519_v4  ;;  %1627 = vmatpush.bf16.msrb.mxu3 %v2755_v8  ;;  %v3200_v54 = vld [vmem:[#allocation5 + $0x3b0] sm:$0xf0]  ;;  %v4135_v55 = vld [vmem:[#allocation5 + $0x4a4] sm:$0xf]  ;;  %v3075_v59 = vor.u32 %v4071_v50, %v3072_v52 }
  0x5d   :  { %1586 = vmatpush.bf16.msrb.mxu0 %v3247_v16  ;;  %v3328_v56 = vld [vmem:[#allocation5 + $0x4b0] sm:$0xf0]  ;;  %v3203_v60 = vor.u32 %v4103_v53, %v3200_v54  ;;  %v4035_v61 = vld [vmem:[#allocation5 + $0x184] sm:$0xf] }
  0x5e   :  { %1600 = vmatpush.bf16.msrb.mxu1 %v3375_v20  ;;  %v2928_v62 = vld [vmem:[#allocation5 + $0x190] sm:$0xf0]  ;;  %v4067_v63 = vld [vmem:[#allocation5 + $0x284] sm:$0xf]  ;;  %v3331_v1 = vor.u32 %v4135_v55, %v3328_v56 }
  0x5f   :  { %v3056_v2 = vld [vmem:[#allocation5 + $0x290] sm:$0xf0]  ;;  %v4099_v3 = vld [vmem:[#allocation5 + $0x384] sm:$0xf]  ;;  %v2931_v7 = vor.u32 %v4035_v61, %v2928_v62 }
  0x60   :  { %1614 = vmatpush.bf16.msrb.mxu2 %v3503_v21  ;;  %1628 = vmatpush.bf16.msrb.mxu3 %v2739_v26  ;;  %v3184_v4 = vld [vmem:[#allocation5 + $0x390] sm:$0xf0]  ;;  %v4131_v5 = vld [vmem:[#allocation5 + $0x484] sm:$0xf]  ;;  %v3059_v8 = vor.u32 %v4067_v63, %v3056_v2 }
  0x61   :  { %1635 = vmatpush.bf16.msra.mxu0 %v2979_v27  ;;  %1601 = vmatmul.bf16.vlgmr.msrb.gmra.mxu1 %v4596_v42  ;;  %v3312_v6 = vld [vmem:[#allocation5 + $0x490] sm:$0xf0]  ;;  %v3187_v9 = vor.u32 %v4099_v3, %v3184_v4  ;;  %v4031_v10 = vld [vmem:[#allocation5 + $0x164] sm:$0xf]  ;;  %v2854_v3 = vld [vmem:[#allocation5 + $0xe8] sm:$0xf] }
  0x62   :  { %1649 = vmatpush.bf16.msra.mxu1 %v3107_v31  ;;  %1587 = vmatmul.bf16.vlgmr.msrb.gmra.mxu0 %v4592_v37  ;;  %v2912_v12 = vld [vmem:[#allocation5 + $0x170] sm:$0xf0]  ;;  %v4063_v13 = vld [vmem:[#allocation5 + $0x264] sm:$0xf]  ;;  %v3315_v14 = vor.u32 %v4131_v5, %v3312_v6  ;;  %v4018_v4 = vld [vmem:[#allocation5 + $0xf4] sm:$0xf0] }
  0x63   :  { %1615 = vmatmul.bf16.vlgmr.msrb.gmra.mxu2 %v4594_v41  ;;  %1629 = vmatmul.bf16.vlgmr.msrb.gmra.mxu3 %v4580_v57  ;;  %v3040_v15 = vld [vmem:[#allocation5 + $0x270] sm:$0xf0]  ;;  %v4095_v16 = vld [vmem:[#allocation5 + $0x364] sm:$0xf]  ;;  %v2915_v20 = vor.u32 %v4031_v10, %v2912_v12 }
  0x64   :  { %1663 = vmatpush.bf16.msra.mxu2 %v3235_v32  ;;  %1677 = vmatpush.bf16.msra.mxu3 %v3363_v36  ;;  %v3168_v17 = vld [vmem:[#allocation5 + $0x370] sm:$0xf0]  ;;  %v4127_v18 = vld [vmem:[#allocation5 + $0x464] sm:$0xf]  ;;  %v3043_v21 = vor.u32 %v4063_v13, %v3040_v15  ;;  %v2855_v13 = vor.u32 %v4018_v4, %v2854_v3 }
  0x65   :  { %1636 = vmatpush.bf16.msra.mxu0 %v2963_v45  ;;  %v3296_v19 = vld [vmem:[#allocation5 + $0x470] sm:$0xf0]  ;;  %v3171_v22 = vor.u32 %v4095_v16, %v3168_v17  ;;  %v4027_v24 = vld [vmem:[#allocation5 + $0x144] sm:$0xf] }
  0x66   :  { %1650 = vmatpush.bf16.msra.mxu1 %v3091_v46  ;;  %v2896_v25 = vld [vmem:[#allocation5 + $0x150] sm:$0xf0]  ;;  %v4059_v26 = vld [vmem:[#allocation5 + $0x244] sm:$0xf]  ;;  %v3299_v27 = vor.u32 %v4127_v18, %v3296_v19  ;;  %v2838_v19 = vld [vmem:[#allocation5 + $0xc8] sm:$0xf] }
  0x67   :  { %v3024_v28 = vld [vmem:[#allocation5 + $0x250] sm:$0xf0]  ;;  %v4091_v29 = vld [vmem:[#allocation5 + $0x344] sm:$0xf]  ;;  %v2899_v33 = vor.u32 %v4027_v24, %v2896_v25 }
  0x68   :  { %1664 = vmatpush.bf16.msra.mxu2 %v3219_v47  ;;  %1678 = vmatpush.bf16.msra.mxu3 %v3347_v51  ;;  %v3152_v30 = vld [vmem:[#allocation5 + $0x350] sm:$0xf0]  ;;  %v4123_v31 = vld [vmem:[#allocation5 + $0x444] sm:$0xf]  ;;  %v3027_v34 = vor.u32 %v4059_v26, %v3024_v28 }
  0x69   :  { %1637 = vmatpush.bf16.msra.mxu0 %v2947_v58  ;;  %v3280_v32 = vld [vmem:[#allocation5 + $0x450] sm:$0xf0]  ;;  %v3155_v35 = vor.u32 %v4091_v29, %v3152_v30  ;;  %v4023_v36 = vld [vmem:[#allocation5 + $0x124] sm:$0xf] }
  0x6a   :  { %1651 = vmatpush.bf16.msra.mxu1 %v3075_v59  ;;  %v2880_v38 = vld [vmem:[#allocation5 + $0x130] sm:$0xf0]  ;;  %v4055_v39 = vld [vmem:[#allocation5 + $0x224] sm:$0xf]  ;;  %v3283_v40 = vor.u32 %v4123_v31, %v3280_v32  ;;  %v2822_v32 = vld [vmem:[#allocation5 + $0xa8] sm:$0xf] }
  0x6b   :  { %v3008_v43 = vld [vmem:[#allocation5 + $0x230] sm:$0xf0]  ;;  %v4087_v44 = vld [vmem:[#allocation5 + $0x324] sm:$0xf]  ;;  %v2883_v48 = vor.u32 %v4023_v36, %v2880_v38 }
  0x6c   :  { %1665 = vmatpush.bf16.msra.mxu2 %v3203_v60  ;;  %1679 = vmatpush.bf16.msra.mxu3 %v3331_v1  ;;  %v3136_v45 = vld [vmem:[#allocation5 + $0x330] sm:$0xf0]  ;;  %v4119_v46 = vld [vmem:[#allocation5 + $0x424] sm:$0xf]  ;;  %v3011_v51 = vor.u32 %v4055_v39, %v3008_v43 }
  0x6d   :  { %1638 = vmatpush.bf16.msra.mxu0 %v2931_v7  ;;  %v3264_v47 = vld [vmem:[#allocation5 + $0x430] sm:$0xf0]  ;;  %v4019_v49 = vld [vmem:[#allocation5 + $0x104] sm:$0xf]  ;;  %v3139_v52 = vor.u32 %v4087_v44, %v3136_v45  ;;  %v2982_v7 = vld [vmem:[#allocation5 + $0x1e8] sm:$0xf] }
  0x6e   :  { %1652 = vmatpush.bf16.msra.mxu1 %v3059_v8  ;;  %v2864_v50 = vld [vmem:[#allocation5 + $0x110] sm:$0xf0]  ;;  %v4051_v53 = vld [vmem:[#allocation5 + $0x204] sm:$0xf]  ;;  %v3267_v56 = vor.u32 %v4119_v46, %v3264_v47  ;;  %v4050_v8 = vld [vmem:[#allocation5 + $0x1f4] sm:$0xf0] }
  0x6f   :  { %v2992_v54 = vld [vmem:[#allocation5 + $0x210] sm:$0xf0]  ;;  %v4083_v55 = vld [vmem:[#allocation5 + $0x304] sm:$0xf]  ;;  %v2867_v1 = vor.u32 %v4019_v49, %v2864_v50  ;;  %v2983_v17 = vor.u32 %v4050_v8, %v2982_v7  ;;  %v2806_v47 = vld [vmem:[#allocation5 + $0x88] sm:$0xf] }
  0x70   :  { %1666 = vmatpush.bf16.msra.mxu2 %v3187_v9  ;;  %1680 = vmatpush.bf16.msra.mxu3 %v3315_v14  ;;  %v3120_v58 = vld [vmem:[#allocation5 + $0x310] sm:$0xf0]  ;;  %v4115_v59 = vld [vmem:[#allocation5 + $0x404] sm:$0xf]  ;;  %v2995_v5 = vor.u32 %v4051_v53, %v2992_v54  ;;  %v2934_v49 = vld [vmem:[#allocation5 + $0x188] sm:$0xf] }
  0x71   :  { %1639 = vmatpush.bf16.msra.mxu0 %v2915_v20  ;;  %v3248_v60 = vld [vmem:[#allocation5 + $0x410] sm:$0xf0]  ;;  %v4175_v61 = vld [vmem:[#allocation5 + $0x5e4] sm:$0xf]  ;;  %v3123_v6 = vor.u32 %v4083_v55, %v3120_v58  ;;  %v4014_v20 = vld [vmem:[#allocation5 + $0xd4] sm:$0xf0] }
  0x72   :  { %1653 = vmatpush.bf16.msra.mxu1 %v3043_v21  ;;  %v3488_v62 = vld [vmem:[#allocation5 + $0x5f0] sm:$0xf0]  ;;  %v4207_v63 = vld [vmem:[#allocation5 + $0x6e4] sm:$0xf]  ;;  %v3251_v9 = vor.u32 %v4115_v59, %v3248_v60  ;;  %v2966_v21 = vld [vmem:[#allocation5 + $0x1c8] sm:$0xf]  ;;  %v2839_v26 = vor.u32 %v4014_v20, %v2838_v19 }
  0x73   :  { %v3616_v2 = vld [vmem:[#allocation5 + $0x6f0] sm:$0xf0]  ;;  %v3491_v10 = vor.u32 %v4175_v61, %v3488_v62  ;;  %v4171_v14 = vld [vmem:[#allocation5 + $0x5c4] sm:$0xf]  ;;  %v4038_v50 = vld [vmem:[#allocation5 + $0x194] sm:$0xf0] }
  0x74   :  { %1667 = vmatpush.bf16.msra.mxu2 %v3171_v22  ;;  %1681 = vmatpush.bf16.msra.mxu3 %v3299_v27  ;;  %v3619_v12 = vor.u32 %v4207_v63, %v3616_v2  ;;  %v3472_v15 = vld [vmem:[#allocation5 + $0x5d0] sm:$0xf0]  ;;  %v4203_v16 = vld [vmem:[#allocation5 + $0x6c4] sm:$0xf]  ;;  %v4046_v22 = vld [vmem:[#allocation5 + $0x1d4] sm:$0xf0]  ;;  %v2935_v58 = vor.u32 %v4038_v50, %v2934_v49 }
  0x75   :  { %1640 = vmatpush.bf16.msra.mxu0 %v2899_v33  ;;  %v3600_v18 = vld [vmem:[#allocation5 + $0x6d0] sm:$0xf0]  ;;  %v3475_v24 = vor.u32 %v4171_v14, %v3472_v15  ;;  %v4167_v27 = vld [vmem:[#allocation5 + $0x5a4] sm:$0xf]  ;;  %v2967_v30 = vor.u32 %v4046_v22, %v2966_v21  ;;  %v4010_v33 = vld [vmem:[#allocation5 + $0xb4] sm:$0xf0] }
  0x76   :  { %1654 = vmatpush.bf16.msra.mxu1 %v3027_v34  ;;  %v3603_v25 = vor.u32 %v4203_v16, %v3600_v18  ;;  %v3456_v28 = vld [vmem:[#allocation5 + $0x5b0] sm:$0xf0]  ;;  %v4199_v29 = vld [vmem:[#allocation5 + $0x6a4] sm:$0xf]  ;;  %v2950_v34 = vld [vmem:[#allocation5 + $0x1a8] sm:$0xf]  ;;  %v2823_v39 = vor.u32 %v4010_v33, %v2822_v32 }
  0x77   :  { %v3584_v31 = vld [vmem:[#allocation5 + $0x6b0] sm:$0xf0]  ;;  %v3459_v36 = vor.u32 %v4167_v27, %v3456_v28  ;;  %v4195_v44 = vld [vmem:[#allocation5 + $0x684] sm:$0xf]  ;;  %v2790_v60 = vld [vmem:[#allocation5 + $0x68] sm:$0xf] }
  0x78   :  { %1668 = vmatpush.bf16.msra.mxu2 %v3155_v35  ;;  %1682 = vmatpush.bf16.msra.mxu3 %v3283_v40  ;;  %v4042_v35 = vld [vmem:[#allocation5 + $0x1b4] sm:$0xf0]  ;;  %v3587_v38 = vor.u32 %v4199_v29, %v3584_v31  ;;  %v4163_v40 = vld [vmem:[#allocation5 + $0x584] sm:$0xf]  ;;  %v3440_v43 = vld [vmem:[#allocation5 + $0x590] sm:$0xf0] }
  0x79   :  { %1641 = vmatpush.bf16.msra.mxu0 %v2883_v48  ;;  %v2951_v45 = vor.u32 %v4042_v35, %v2950_v34  ;;  %v3568_v46 = vld [vmem:[#allocation5 + $0x690] sm:$0xf0]  ;;  %v4006_v48 = vld [vmem:[#allocation5 + $0x94] sm:$0xf0]  ;;  %v4159_v54 = vld [vmem:[#allocation5 + $0x564] sm:$0xf] }
  0x7a   :  { %1655 = vmatpush.bf16.msra.mxu1 %v3011_v51  ;;  %v3443_v51 = vor.u32 %v4163_v40, %v3440_v43  ;;  %v2807_v53 = vor.u32 %v4006_v48, %v2806_v47  ;;  %v3424_v55 = vld [vmem:[#allocation5 + $0x570] sm:$0xf0]  ;;  %v4002_v61 = vld [vmem:[#allocation5 + $0x74] sm:$0xf0]  ;;  %v2918_v62 = vld [vmem:[#allocation5 + $0x168] sm:$0xf] }
  0x7b   :  { %v3552_v59 = vld [vmem:[#allocation5 + $0x670] sm:$0xf0]  ;;  %v4034_v63 = vld [vmem:[#allocation5 + $0x174] sm:$0xf0]  ;;  %v2791_v3 = vor.u32 %v4002_v61, %v2790_v60  ;;  %v4155_v4 = vld [vmem:[#allocation5 + $0x544] sm:$0xf] }
  0x7c   :  { %1669 = vmatpush.bf16.msra.mxu2 %v3139_v52  ;;  %1683 = vmatpush.bf16.msra.mxu3 %v3267_v56  ;;  %v3571_v52 = vor.u32 %v4195_v44, %v3568_v46  ;;  %v4191_v56 = vld [vmem:[#allocation5 + $0x664] sm:$0xf]  ;;  %v2919_v7 = vor.u32 %v4034_v63, %v2918_v62  ;;  %v3536_v8 = vld [vmem:[#allocation5 + $0x650] sm:$0xf0]  ;;  %v2758_v22 = vld [vmem:[#allocation5 + $0x28] sm:$0xf] }
  0x7d   :  { %1642 = vmatpush.bf16.msra.mxu0 %v2867_v1  ;;  %v3427_v1 = vor.u32 %v4159_v54, %v3424_v55  ;;  %v3555_v2 = vor.u32 %v4191_v56, %v3552_v59  ;;  %v3392_v18 = vld [vmem:[#allocation5 + $0x530] sm:$0xf0]  ;;  %v4183_v19 = vld [vmem:[#allocation5 + $0x624] sm:$0xf]  ;;  %v2742_v34 = vld [vmem:[#allocation5 + $0x8] sm:$0xf] }
  0x7e   :  { %1656 = vmatpush.bf16.msra.mxu1 %v2995_v5  ;;  %v3408_v5 = vld [vmem:[#allocation5 + $0x550] sm:$0xf0]  ;;  %v4147_v28 = vld [vmem:[#allocation5 + $0x504] sm:$0xf]  ;;  %v3110_v40 = vld [vmem:[#allocation5 + $0x2e8] sm:$0xf] }
  0x7f   :  { %v3411_v14 = vor.u32 %v4155_v4, %v3408_v5  ;;  %v3520_v21 = vld [vmem:[#allocation5 + $0x630] sm:$0xf0]  ;;  %v4179_v32 = vld [vmem:[#allocation5 + $0x604] sm:$0xf]  ;;  %v4082_v43 = vld [vmem:[#allocation5 + $0x2f4] sm:$0xf0] }
  0x80   :  { %1670 = vmatpush.bf16.msra.mxu2 %v3123_v6  ;;  %1684 = vmatpush.bf16.msra.mxu3 %v3251_v9  ;;  %v4187_v6 = vld [vmem:[#allocation5 + $0x644] sm:$0xf]  ;;  %v2774_v9 = vld [vmem:[#allocation5 + $0x48] sm:$0xf]  ;;  %v3376_v29 = vld [vmem:[#allocation5 + $0x510] sm:$0xf0]  ;;  %v3111_v54 = vor.u32 %v4082_v43, %v3110_v40 }
  0x81   :  { %1691 = vmatpush.bf16.msrb.mxu0 %v3491_v10  ;;  %1657 = vmatmul.bf16.vlgmr.msra.gmra.mxu1 %v4582_v0  ;;  %v3998_v10 = vld [vmem:[#allocation5 + $0x54] sm:$0xf0]  ;;  %v3539_v15 = vor.u32 %v4187_v6, %v3536_v8  ;;  %v3504_v33 = vld [vmem:[#allocation5 + $0x610] sm:$0xf0]  ;;  %v3238_v44 = vld [vmem:[#allocation5 + $0x3e8] sm:$0xf] }
  0x82   :  { %1705 = vmatpush.bf16.msrb.mxu1 %v3619_v12  ;;  %1643 = vmatmul.bf16.vlgmr.msra.gmra.mxu0 %v4586_v11  ;;  %v2902_v12 = vld [vmem:[#allocation5 + $0x148] sm:$0xf]  ;;  %v2775_v16 = vor.u32 %v3998_v10, %v2774_v9  ;;  %v4114_v46 = vld [vmem:[#allocation5 + $0x3f4] sm:$0xf0]  ;;  %v3507_v49 = vor.u32 %v4179_v32, %v3504_v33 }
  0x83   :  { %1671 = vmatmul.bf16.vlgmr.msra.gmra.mxu2 %v4589_v23  ;;  %1685 = vmatmul.bf16.vlgmr.msra.gmra.mxu3 %v4592_v37  ;;  %v3366_v47 = vld [vmem:[#allocation5 + $0x4e8] sm:$0xf]  ;;  %v4146_v48 = vld [vmem:[#allocation5 + $0x4f4] sm:$0xf0]  ;;  %v3239_v55 = vor.u32 %v4114_v46, %v3238_v44 }
  0x84   :  { %1719 = vmatpush.bf16.msrb.mxu2 %v2855_v13  ;;  %1733 = vmatpush.bf16.msrb.mxu3 %v2983_v17  ;;  %v4030_v13 = vld [vmem:[#allocation5 + $0x154] sm:$0xf0]  ;;  %v4151_v17 = vld [vmem:[#allocation5 + $0x524] sm:$0xf]  ;;  %v3367_v56 = vor.u32 %v4146_v48, %v3366_v47  ;;  %v3222_v60 = vld [vmem:[#allocation5 + $0x3c8] sm:$0xf] }
  0x85   :  { %1692 = vmatpush.bf16.msrb.mxu0 %v3475_v24  ;;  %v2903_v20 = vor.u32 %v4030_v13, %v2902_v12  ;;  %v3994_v24 = vld [vmem:[#allocation5 + $0x34] sm:$0xf0]  ;;  %v3395_v27 = vor.u32 %v4151_v17, %v3392_v18  ;;  %v3350_v63 = vld [vmem:[#allocation5 + $0x4c8] sm:$0xf] }
  0x86   :  { %1706 = vmatpush.bf16.msrb.mxu1 %v3603_v25  ;;  %v2886_v25 = vld [vmem:[#allocation5 + $0x128] sm:$0xf]  ;;  %v2759_v31 = vor.u32 %v3994_v24, %v2758_v22  ;;  %v4078_v59 = vld [vmem:[#allocation5 + $0x2d4] sm:$0xf0] }
  0x87   :  { %v4110_v62 = vld [vmem:[#allocation5 + $0x3d4] sm:$0xf0]  ;;  %v3206_v9 = vld [vmem:[#allocation5 + $0x3a8] sm:$0xf] }
  0x88   :  { %1720 = vmatpush.bf16.msrb.mxu2 %v2839_v26  ;;  %1734 = vmatpush.bf16.msrb.mxu3 %v2967_v30  ;;  %v4026_v26 = vld [vmem:[#allocation5 + $0x134] sm:$0xf0]  ;;  %v3523_v30 = vor.u32 %v4183_v19, %v3520_v21  ;;  %v3223_v5 = vor.u32 %v4110_v62, %v3222_v60  ;;  %v3334_v13 = vld [vmem:[#allocation5 + $0x4a8] sm:$0xf] }
  0x89   :  { %1693 = vmatpush.bf16.msrb.mxu0 %v3459_v36  ;;  %v2887_v35 = vor.u32 %v4026_v26, %v2886_v25  ;;  %v3990_v36 = vld [vmem:[#allocation5 + $0x14] sm:$0xf0]  ;;  %v3190_v22 = vld [vmem:[#allocation5 + $0x388] sm:$0xf] }
  0x8a   :  { %1707 = vmatpush.bf16.msrb.mxu1 %v3587_v38  ;;  %v2870_v38 = vld [vmem:[#allocation5 + $0x108] sm:$0xf]  ;;  %v2743_v50 = vor.u32 %v3990_v36, %v2742_v34  ;;  %v4074_v8 = vld [vmem:[#allocation5 + $0x2b4] sm:$0xf0] }
  0x8b   :  { %v4106_v12 = vld [vmem:[#allocation5 + $0x3b4] sm:$0xf0]  ;;  %v3318_v26 = vld [vmem:[#allocation5 + $0x488] sm:$0xf] }
  0x8c   :  { %1721 = vmatpush.bf16.msrb.mxu2 %v2823_v39  ;;  %1735 = vmatpush.bf16.msrb.mxu3 %v2951_v45  ;;  %v4022_v39 = vld [vmem:[#allocation5 + $0x114] sm:$0xf0]  ;;  %v3379_v45 = vor.u32 %v4147_v28, %v3376_v29  ;;  %v3207_v18 = vor.u32 %v4106_v12, %v3206_v9  ;;  %v3446_v28 = vld [vmem:[#allocation5 + $0x588] sm:$0xf] }
  0x8d   :  { %1694 = vmatpush.bf16.msrb.mxu0 %v3443_v51  ;;  %v3494_v51 = vld [vmem:[#allocation5 + $0x5e8] sm:$0xf]  ;;  %v4070_v21 = vld [vmem:[#allocation5 + $0x294] sm:$0xf0] }
  0x8e   :  { %1708 = vmatpush.bf16.msrb.mxu1 %v3571_v52  ;;  %v4178_v52 = vld [vmem:[#allocation5 + $0x5f4] sm:$0xf0]  ;;  %v3046_v33 = vld [vmem:[#allocation5 + $0x268] sm:$0xf] }
  0x8f   :  { %v3495_v61 = vor.u32 %v4178_v52, %v3494_v51  ;;  %v4102_v25 = vld [vmem:[#allocation5 + $0x394] sm:$0xf0]  ;;  %v3430_v43 = vld [vmem:[#allocation5 + $0x568] sm:$0xf] }
  0x90   :  { %1722 = vmatpush.bf16.msrb.mxu2 %v2807_v53  ;;  %1736 = vmatpush.bf16.msrb.mxu3 %v2935_v58  ;;  %v2871_v53 = vor.u32 %v4022_v39, %v2870_v38  ;;  %v3094_v58 = vld [vmem:[#allocation5 + $0x2c8] sm:$0xf]  ;;  %v4166_v29 = vld [vmem:[#allocation5 + $0x594] sm:$0xf0] }
  0x91   :  { %1695 = vmatpush.bf16.msrb.mxu0 %v3427_v1  ;;  %v4142_v1 = vld [vmem:[#allocation5 + $0x4d4] sm:$0xf0]  ;;  %v3095_v4 = vor.u32 %v4078_v59, %v3094_v58  ;;  %v3447_v36 = vor.u32 %v4166_v29, %v3446_v28  ;;  %v3302_v39 = vld [vmem:[#allocation5 + $0x468] sm:$0xf] }
  0x92   :  { %1709 = vmatpush.bf16.msrb.mxu1 %v3555_v2  ;;  %v3478_v2 = vld [vmem:[#allocation5 + $0x5c8] sm:$0xf]  ;;  %v3351_v6 = vor.u32 %v4142_v1, %v3350_v63  ;;  %v4066_v34 = vld [vmem:[#allocation5 + $0x274] sm:$0xf0] }
  0x93   :  { %v4098_v38 = vld [vmem:[#allocation5 + $0x374] sm:$0xf0]  ;;  %v3030_v48 = vld [vmem:[#allocation5 + $0x248] sm:$0xf] }
  0x94   :  { %1723 = vmatpush.bf16.msrb.mxu2 %v2791_v3  ;;  %1737 = vmatpush.bf16.msrb.mxu3 %v2919_v7  ;;  %v4174_v3 = vld [vmem:[#allocation5 + $0x5d4] sm:$0xf0]  ;;  %v3078_v7 = vld [vmem:[#allocation5 + $0x2a8] sm:$0xf] }
  0x95   :  { %1696 = vmatpush.bf16.msrb.mxu0 %v3411_v14  ;;  %v3479_v10 = vor.u32 %v4174_v3, %v3478_v2  ;;  %v4138_v14 = vld [vmem:[#allocation5 + $0x4b4] sm:$0xf0]  ;;  %v3079_v17 = vor.u32 %v4074_v8, %v3078_v7  ;;  %v3142_v63 = vld [vmem:[#allocation5 + $0x328] sm:$0xf] }
  0x96   :  { %1710 = vmatpush.bf16.msrb.mxu1 %v3539_v15  ;;  %v3462_v15 = vld [vmem:[#allocation5 + $0x5a8] sm:$0xf]  ;;  %v3335_v19 = vor.u32 %v4138_v14, %v3334_v13  ;;  %v4130_v40 = vld [vmem:[#allocation5 + $0x474] sm:$0xf0] }
  0x97   :  { %v4162_v44 = vld [vmem:[#allocation5 + $0x574] sm:$0xf0]  ;;  %v3303_v47 = vor.u32 %v4130_v40, %v3302_v39  ;;  %v3270_v3 = vld [vmem:[#allocation5 + $0x428] sm:$0xf]  ;;  %v4012_v39 = vld [vmem:[#allocation5 + $0xcc] sm:$0xf] }
  0x98   :  { %1724 = vmatpush.bf16.msrb.mxu2 %v2775_v16  ;;  %1738 = vmatpush.bf16.msrb.mxu3 %v2903_v20  ;;  %v4170_v16 = vld [vmem:[#allocation5 + $0x5b4] sm:$0xf0]  ;;  %v3062_v20 = vld [vmem:[#allocation5 + $0x288] sm:$0xf]  ;;  %v3431_v51 = vor.u32 %v4162_v44, %v3430_v43  ;;  %v2840_v43 = vld [vmem:[#allocation5 + $0xd8] sm:$0xf0] }
  0x99   :  { %1697 = vmatpush.bf16.msrb.mxu0 %v3395_v27  ;;  %v3463_v24 = vor.u32 %v4170_v16, %v3462_v15  ;;  %v4134_v27 = vld [vmem:[#allocation5 + $0x494] sm:$0xf0]  ;;  %v2998_v8 = vld [vmem:[#allocation5 + $0x208] sm:$0xf]  ;;  %v4044_v44 = vld [vmem:[#allocation5 + $0x1cc] sm:$0xf] }
  0x9a   :  { %1711 = vmatpush.bf16.msrb.mxu1 %v3523_v30  ;;  %v3063_v30 = vor.u32 %v4070_v21, %v3062_v20  ;;  %v3319_v32 = vor.u32 %v4134_v27, %v3318_v26  ;;  %v4094_v52 = vld [vmem:[#allocation5 + $0x354] sm:$0xf0]  ;;  %v3126_v13 = vld [vmem:[#allocation5 + $0x308] sm:$0xf]  ;;  %v4048_v26 = vld [vmem:[#allocation5 + $0x1ec] sm:$0xf] }
  0x9b   :  { %v4058_v62 = vld [vmem:[#allocation5 + $0x234] sm:$0xf0]  ;;  %v3254_v15 = vld [vmem:[#allocation5 + $0x408] sm:$0xf]  ;;  %v2984_v27 = vld [vmem:[#allocation5 + $0x1f8] sm:$0xf0] }
  0x9c   :  { %1725 = vmatpush.bf16.msrb.mxu2 %v2759_v31  ;;  %1739 = vmatpush.bf16.msrb.mxu3 %v2887_v35  ;;  %v3191_v31 = vor.u32 %v4102_v25, %v3190_v22  ;;  %v3174_v35 = vld [vmem:[#allocation5 + $0x368] sm:$0xf]  ;;  %v4090_v2 = vld [vmem:[#allocation5 + $0x334] sm:$0xf0]  ;;  %v4016_v22 = vld [vmem:[#allocation5 + $0xec] sm:$0xf] }
  0x9d   :  { %1698 = vmatpush.bf16.msrb.mxu0 %v3379_v45  ;;  %v3047_v45 = vor.u32 %v4066_v34, %v3046_v33  ;;  %v3175_v46 = vor.u32 %v4098_v38, %v3174_v35  ;;  %v4054_v9 = vld [vmem:[#allocation5 + $0x214] sm:$0xf0]  ;;  %v3622_v20 = vld [vmem:[#allocation5 + $0x6e8] sm:$0xf]  ;;  %v2856_v25 = vld [vmem:[#allocation5 + $0xf8] sm:$0xf0]  ;;  %v2987_v35 = vor.u32 %v4048_v26, %v2984_v27 }
  0x9e   :  { %1712 = vmatpush.bf16.msrb.mxu1 %v3507_v49  ;;  %v4062_v49 = vld [vmem:[#allocation5 + $0x254] sm:$0xf0]  ;;  %v2859_v34 = vor.u32 %v4016_v22, %v2856_v25  ;;  %v3048_v22 = vld [vmem:[#allocation5 + $0x278] sm:$0xf0]  ;;  %v3542_v27 = vld [vmem:[#allocation5 + $0x648] sm:$0xf] }
  0x9f   :  { %v3031_v58 = vor.u32 %v4062_v49, %v3030_v48  ;;  %v4086_v14 = vld [vmem:[#allocation5 + $0x314] sm:$0xf0]  ;;  %v2843_v49 = vor.u32 %v4012_v39, %v2840_v43 }
  0xa0   :  { %1726 = vmatpush.bf16.msrb.mxu2 %v2743_v50  ;;  %1740 = vmatpush.bf16.msrb.mxu3 %v2871_v53  ;;  %v3158_v50 = vld [vmem:[#allocation5 + $0x348] sm:$0xf]  ;;  %v4210_v21 = vld [vmem:[#allocation5 + $0x6f4] sm:$0xf0]  ;;  %v3127_v28 = vor.u32 %v4086_v14, %v3126_v13 }
  0xa1   :  { %1747 = vmatpush.bf16.msra.mxu0 %v3111_v54  ;;  %1713 = vmatmul.bf16.vlgmr.msrb.gmra.mxu1 %v4594_v41  ;;  %v3286_v53 = vld [vmem:[#allocation5 + $0x448] sm:$0xf]  ;;  %v4126_v54 = vld [vmem:[#allocation5 + $0x454] sm:$0xf0]  ;;  %v3159_v59 = vor.u32 %v4094_v52, %v3158_v50  ;;  %v3623_v33 = vor.u32 %v4210_v21, %v3622_v20  ;;  %v2920_v20 = vld [vmem:[#allocation5 + $0x178] sm:$0xf0] }
  0xa2   :  { %1761 = vmatpush.bf16.msra.mxu1 %v3239_v55  ;;  %1699 = vmatmul.bf16.vlgmr.msrb.gmra.mxu0 %v4596_v42  ;;  %v3414_v55 = vld [vmem:[#allocation5 + $0x548] sm:$0xf]  ;;  %v3287_v60 = vor.u32 %v4126_v54, %v3286_v53  ;;  %v4206_v38 = vld [vmem:[#allocation5 + $0x6d4] sm:$0xf0]  ;;  %v4008_v53 = vld [vmem:[#allocation5 + $0xac] sm:$0xf] }
  0xa3   :  { %1727 = vmatmul.bf16.vlgmr.msrb.gmra.mxu2 %v4580_v57  ;;  %1741 = vmatmul.bf16.vlgmr.msrb.gmra.mxu3 %v4586_v11  ;;  %v4202_v52 = vld [vmem:[#allocation5 + $0x6b4] sm:$0xf0]  ;;  %v3558_v14 = vld [vmem:[#allocation5 + $0x668] sm:$0xf]  ;;  %v4064_v21 = vld [vmem:[#allocation5 + $0x26c] sm:$0xf] }
  0xa4   :  { %1775 = vmatpush.bf16.msra.mxu2 %v3367_v56  ;;  %1789 = vmatpush.bf16.msra.mxu3 %v3495_v61  ;;  %v4158_v56 = vld [vmem:[#allocation5 + $0x554] sm:$0xf0]  ;;  %v3014_v61 = vld [vmem:[#allocation5 + $0x228] sm:$0xf] }
  0xa5   :  { %1748 = vmatpush.bf16.msra.mxu0 %v3095_v4  ;;  %v3415_v1 = vor.u32 %v4158_v56, %v3414_v55  ;;  %v4122_v4 = vld [vmem:[#allocation5 + $0x434] sm:$0xf0]  ;;  %v3015_v7 = vor.u32 %v4058_v62, %v3014_v61  ;;  %v2824_v55 = vld [vmem:[#allocation5 + $0xb8] sm:$0xf0]  ;;  %v4040_v56 = vld [vmem:[#allocation5 + $0x1ac] sm:$0xf] }
  0xa6   :  { %1762 = vmatpush.bf16.msra.mxu1 %v3223_v5  ;;  %v3398_v5 = vld [vmem:[#allocation5 + $0x528] sm:$0xf]  ;;  %v3271_v12 = vor.u32 %v4122_v4, %v3270_v3  ;;  %v2827_v62 = vor.u32 %v4008_v53, %v2824_v55  ;;  %v4004_v3 = vld [vmem:[#allocation5 + $0x8c] sm:$0xf]  ;;  %v4186_v43 = vld [vmem:[#allocation5 + $0x634] sm:$0xf0] }
  0xa7   :  { %v4182_v53 = vld [vmem:[#allocation5 + $0x614] sm:$0xf0] }
  0xa8   :  { %1776 = vmatpush.bf16.msra.mxu2 %v3351_v6  ;;  %1790 = vmatpush.bf16.msra.mxu3 %v3479_v10  ;;  %v4154_v6 = vld [vmem:[#allocation5 + $0x534] sm:$0xf0]  ;;  %v3143_v10 = vor.u32 %v4090_v2, %v3142_v63 }
  0xa9   :  { %1749 = vmatpush.bf16.msra.mxu0 %v3079_v17  ;;  %v3399_v16 = vor.u32 %v4154_v6, %v3398_v5  ;;  %v4118_v17 = vld [vmem:[#allocation5 + $0x414] sm:$0xf0]  ;;  %v2808_v5 = vld [vmem:[#allocation5 + $0x98] sm:$0xf0]  ;;  %v4036_v6 = vld [vmem:[#allocation5 + $0x18c] sm:$0xf] }
  0xaa   :  { %1763 = vmatpush.bf16.msra.mxu1 %v3207_v18  ;;  %v3382_v18 = vld [vmem:[#allocation5 + $0x508] sm:$0xf]  ;;  %v3255_v29 = vor.u32 %v4118_v17, %v3254_v15  ;;  %v4198_v2 = vld [vmem:[#allocation5 + $0x694] sm:$0xf0] }
  0xab   :  { %v4194_v15 = vld [vmem:[#allocation5 + $0x674] sm:$0xf0] }
  0xac   :  { %1777 = vmatpush.bf16.msra.mxu2 %v3335_v19  ;;  %1791 = vmatpush.bf16.msra.mxu3 %v3463_v24  ;;  %v4150_v19 = vld [vmem:[#allocation5 + $0x514] sm:$0xf0]  ;;  %v2999_v24 = vor.u32 %v4054_v9, %v2998_v8  ;;  %v4068_v8 = vld [vmem:[#allocation5 + $0x28c] sm:$0xf]  ;;  %v3064_v9 = vld [vmem:[#allocation5 + $0x298] sm:$0xf0] }
  0xad   :  { %1750 = vmatpush.bf16.msra.mxu0 %v3063_v30  ;;  %v4080_v30 = vld [vmem:[#allocation5 + $0x2ec] sm:$0xf]  ;;  %v3067_v17 = vor.u32 %v4068_v8, %v3064_v9 }
  0xae   :  { %1764 = vmatpush.bf16.msra.mxu1 %v3191_v31  ;;  %v3112_v31 = vld [vmem:[#allocation5 + $0x2f8] sm:$0xf0] }
  0xaf   :  { %v3115_v40 = vor.u32 %v4080_v30, %v3112_v31  ;;  %v3051_v30 = vor.u32 %v4064_v21, %v3048_v22  ;;  %v2776_v31 = vld [vmem:[#allocation5 + $0x58] sm:$0xf0]  ;;  %v4172_v22 = vld [vmem:[#allocation5 + $0x5cc] sm:$0xf] }
  0xb0   :  { %1778 = vmatpush.bf16.msra.mxu2 %v3319_v32  ;;  %1792 = vmatpush.bf16.msra.mxu3 %v3447_v36  ;;  %v3383_v32 = vor.u32 %v4150_v19, %v3382_v18  ;;  %v3606_v36 = vld [vmem:[#allocation5 + $0x6c8] sm:$0xf]  ;;  %v2792_v18 = vld [vmem:[#allocation5 + $0x78] sm:$0xf0]  ;;  %v4032_v19 = vld [vmem:[#allocation5 + $0x16c] sm:$0xf] }
  0xb1   :  { %1751 = vmatpush.bf16.msra.mxu0 %v3047_v45  ;;  %v2968_v45 = vld [vmem:[#allocation5 + $0x1d8] sm:$0xf0]  ;;  %v3607_v48 = vor.u32 %v4206_v38, %v3606_v36  ;;  %v2923_v26 = vor.u32 %v4032_v19, %v2920_v20  ;;  %v4140_v19 = vld [vmem:[#allocation5 + $0x4cc] sm:$0xf] }
  0xb2   :  { %1765 = vmatpush.bf16.msra.mxu1 %v3175_v46  ;;  %v4076_v46 = vld [vmem:[#allocation5 + $0x2cc] sm:$0xf]  ;;  %v2971_v50 = vor.u32 %v4044_v44, %v2968_v45  ;;  %v3352_v21 = vld [vmem:[#allocation5 + $0x4d8] sm:$0xf0] }
  0xb3   :  { %v3992_v44 = vld [vmem:[#allocation5 + $0x2c] sm:$0xf] }
  0xb4   :  { %1779 = vmatpush.bf16.msra.mxu2 %v3303_v47  ;;  %1793 = vmatpush.bf16.msra.mxu3 %v3431_v51  ;;  %v3096_v47 = vld [vmem:[#allocation5 + $0x2d8] sm:$0xf0]  ;;  %v3590_v51 = vld [vmem:[#allocation5 + $0x6a8] sm:$0xf] }
  0xb5   :  { %1752 = vmatpush.bf16.msra.mxu0 %v3031_v58  ;;  %v3099_v54 = vor.u32 %v4076_v46, %v3096_v47  ;;  %v2952_v58 = vld [vmem:[#allocation5 + $0x1b8] sm:$0xf0]  ;;  %v3591_v61 = vor.u32 %v4202_v52, %v3590_v51  ;;  %v4024_v47 = vld [vmem:[#allocation5 + $0x12c] sm:$0xf]  ;;  %v3510_v52 = vld [vmem:[#allocation5 + $0x608] sm:$0xf] }
  0xb6   :  { %1766 = vmatpush.bf16.msra.mxu1 %v3159_v59  ;;  %v4072_v59 = vld [vmem:[#allocation5 + $0x2ac] sm:$0xf]  ;;  %v2955_v63 = vor.u32 %v4040_v56, %v2952_v58  ;;  %v2760_v46 = vld [vmem:[#allocation5 + $0x38] sm:$0xf0] }
  0xb7   :  { %v3988_v56 = vld [vmem:[#allocation5 + $0xc] sm:$0xf]  ;;  %v2744_v58 = vld [vmem:[#allocation5 + $0x18] sm:$0xf0] }
  0xb8   :  { %1780 = vmatpush.bf16.msra.mxu2 %v3287_v60  ;;  %1794 = vmatpush.bf16.msra.mxu3 %v3415_v1  ;;  %v3080_v60 = vld [vmem:[#allocation5 + $0x2b8] sm:$0xf0]  ;;  %v3574_v1 = vld [vmem:[#allocation5 + $0x688] sm:$0xf]  ;;  %v2747_v8 = vor.u32 %v3988_v56, %v2744_v58  ;;  %v4128_v56 = vld [vmem:[#allocation5 + $0x46c] sm:$0xf] }
  0xb9   :  { %1753 = vmatpush.bf16.msra.mxu0 %v3015_v7  ;;  %v3083_v4 = vor.u32 %v4072_v59, %v3080_v60  ;;  %v2936_v7 = vld [vmem:[#allocation5 + $0x198] sm:$0xf0]  ;;  %v4020_v59 = vld [vmem:[#allocation5 + $0x10c] sm:$0xf] }
  0xba   :  { %1767 = vmatpush.bf16.msra.mxu1 %v3143_v10  ;;  %v3575_v10 = vor.u32 %v4198_v2, %v3574_v1  ;;  %v2939_v13 = vor.u32 %v4036_v6, %v2936_v7  ;;  %v4112_v1 = vld [vmem:[#allocation5 + $0x3ec] sm:$0xf]  ;;  %v3240_v2 = vld [vmem:[#allocation5 + $0x3f8] sm:$0xf0] }
  0xbb   :  { %v4176_v6 = vld [vmem:[#allocation5 + $0x5ec] sm:$0xf]  ;;  %v3496_v7 = vld [vmem:[#allocation5 + $0x5f8] sm:$0xf0] }
  0xbc   :  { %1781 = vmatpush.bf16.msra.mxu2 %v3271_v12  ;;  %1795 = vmatpush.bf16.msra.mxu3 %v3399_v16  ;;  %v2811_v12 = vor.u32 %v4004_v3, %v2808_v5  ;;  %v4000_v16 = vld [vmem:[#allocation5 + $0x6c] sm:$0xf]  ;;  %v3368_v5 = vld [vmem:[#allocation5 + $0x4f8] sm:$0xf0] }
  0xbd   :  { %1754 = vmatpush.bf16.msra.mxu0 %v2999_v24  ;;  %v3559_v24 = vor.u32 %v4194_v15, %v3558_v14  ;;  %v2795_v25 = vor.u32 %v4000_v16, %v2792_v18  ;;  %v4144_v3 = vld [vmem:[#allocation5 + $0x4ec] sm:$0xf]  ;;  %v3243_v14 = vor.u32 %v4112_v1, %v3240_v2  ;;  %v3499_v16 = vor.u32 %v4176_v6, %v3496_v7  ;;  %v3224_v18 = vld [vmem:[#allocation5 + $0x3d8] sm:$0xf0] }
  0xbe   :  { %1768 = vmatpush.bf16.msra.mxu1 %v3127_v28  ;;  %v4190_v28 = vld [vmem:[#allocation5 + $0x654] sm:$0xf0]  ;;  %v3371_v15 = vor.u32 %v4144_v3, %v3368_v5  ;;  %v3560_v1 = vld [vmem:[#allocation5 + $0x678] sm:$0xf0]  ;;  %v4620_v2 = vpop.f32.mrf.mxu1  ;;  %v4092_v6 = vld [vmem:[#allocation5 + $0x34c] sm:$0xf] }
  0xbf   :  { %v3543_v36 = vor.u32 %v4190_v28, %v3542_v27  ;;  %v3355_v28 = vor.u32 %v4140_v19, %v3352_v21  ;;  %v3160_v7 = vld [vmem:[#allocation5 + $0x358] sm:$0xf0]  ;;  %v4088_v19 = vld [vmem:[#allocation5 + $0x32c] sm:$0xf] }
  0xc0   :  { %1782 = vmatpush.bf16.msra.mxu2 %v3255_v29  ;;  %1796 = vmatpush.bf16.msra.mxu3 %v3383_v32  ;;  %v3996_v29 = vld [vmem:[#allocation5 + $0x4c] sm:$0xf] }
  0xc1   :  { %1803 = vmatpush.bf16.msrb.mxu0 %v3623_v33  ;;  %1769 = vmatmul.bf16.vlgmr.msra.gmra.mxu1 %v4589_v23  ;;  %v4028_v32 = vld [vmem:[#allocation5 + $0x14c] sm:$0xf]  ;;  %v2904_v33 = vld [vmem:[#allocation5 + $0x158] sm:$0xf0]  ;;  %v2779_v38 = vor.u32 %v3996_v29, %v2776_v31 }
  0xc2   :  { %1817 = vmatpush.bf16.msrb.mxu1 %v2859_v34  ;;  %1755 = vmatmul.bf16.vlgmr.msra.gmra.mxu0 %v4582_v0  ;;  %v4060_v34 = vld [vmem:[#allocation5 + $0x24c] sm:$0xf]  ;;  %v2907_v39 = vor.u32 %v4028_v32, %v2904_v33  ;;  %v3208_v31 = vld [vmem:[#allocation5 + $0x3b8] sm:$0xf0] }
  0xc3   :  { %1783 = vmatmul.bf16.vlgmr.msra.gmra.mxu2 %v4592_v37  ;;  %1797 = vmatmul.bf16.vlgmr.msra.gmra.mxu3 %v4596_v42  ;;  %v4136_v32 = vld [vmem:[#allocation5 + $0x4ac] sm:$0xf] }
  0xc4   :  { %1831 = vmatpush.bf16.msrb.mxu2 %v2987_v35  ;;  %1845 = vmatpush.bf16.msrb.mxu3 %v3115_v40  ;;  %v3032_v35 = vld [vmem:[#allocation5 + $0x258] sm:$0xf0]  ;;  %v3526_v40 = vld [vmem:[#allocation5 + $0x628] sm:$0xf]  ;;  %v4120_v21 = vld [vmem:[#allocation5 + $0x42c] sm:$0xf] }
  0xc5   :  { %1804 = vmatpush.bf16.msrb.mxu0 %v3607_v48  ;;  %v3035_v45 = vor.u32 %v4060_v34, %v3032_v35  ;;  %v2888_v48 = vld [vmem:[#allocation5 + $0x138] sm:$0xf0]  ;;  %v3527_v51 = vor.u32 %v4186_v43, %v3526_v40  ;;  %v4168_v35 = vld [vmem:[#allocation5 + $0x5ac] sm:$0xf] }
  0xc6   :  { %1818 = vmatpush.bf16.msrb.mxu1 %v2843_v49  ;;  %v4056_v49 = vld [vmem:[#allocation5 + $0x22c] sm:$0xf]  ;;  %v2891_v55 = vor.u32 %v4024_v47, %v2888_v48  ;;  %v3336_v34 = vld [vmem:[#allocation5 + $0x4b8] sm:$0xf0] }
  0xc7   :  { %v3339_v43 = vor.u32 %v4136_v32, %v3336_v34  ;;  %v4132_v47 = vld [vmem:[#allocation5 + $0x48c] sm:$0xf] }
  0xc8   :  { %1832 = vmatpush.bf16.msrb.mxu2 %v2971_v50  ;;  %1846 = vmatpush.bf16.msrb.mxu3 %v3099_v54  ;;  %v3016_v50 = vld [vmem:[#allocation5 + $0x238] sm:$0xf0]  ;;  %v2763_v54 = vor.u32 %v3992_v44, %v2760_v46  ;;  %v4084_v32 = vld [vmem:[#allocation5 + $0x30c] sm:$0xf] }
  0xc9   :  { %1805 = vmatpush.bf16.msrb.mxu0 %v3591_v61  ;;  %v3019_v60 = vor.u32 %v4056_v49, %v3016_v50  ;;  %v2872_v61 = vld [vmem:[#allocation5 + $0x118] sm:$0xf0]  ;;  %v4164_v50 = vld [vmem:[#allocation5 + $0x58c] sm:$0xf] }
  0xca   :  { %1819 = vmatpush.bf16.msrb.mxu1 %v2827_v62  ;;  %v4052_v62 = vld [vmem:[#allocation5 + $0x20c] sm:$0xf]  ;;  %v2875_v9 = vor.u32 %v4020_v59, %v2872_v61  ;;  %v3192_v46 = vld [vmem:[#allocation5 + $0x398] sm:$0xf0] }
  0xcb   :  { %v3320_v49 = vld [vmem:[#allocation5 + $0x498] sm:$0xf0] }
  0xcc   :  { %1833 = vmatpush.bf16.msrb.mxu2 %v2955_v63  ;;  %1847 = vmatpush.bf16.msrb.mxu3 %v3083_v4  ;;  %v3000_v63 = vld [vmem:[#allocation5 + $0x218] sm:$0xf0]  ;;  %v3511_v4 = vor.u32 %v4182_v53, %v3510_v52  ;;  %v3323_v53 = vor.u32 %v4132_v47, %v3320_v49  ;;  %v3686_v49 = vld [vmem:[#allocation8 + $0x70] sm:$0xf] }
  0xcd   :  { %1806 = vmatpush.bf16.msrb.mxu0 %v3575_v10  ;;  %v4208_v10 = vld [vmem:[#allocation5 + $0x6ec] sm:$0xf]  ;;  %v3576_v52 = vld [vmem:[#allocation5 + $0x698] sm:$0xf0] }
  0xce   :  { %1820 = vmatpush.bf16.msrb.mxu1 %v2811_v12  ;;  %v3624_v12 = vld [vmem:[#allocation5 + $0x6f8] sm:$0xf0] }
  0xcf   :  { %v3627_v20 = vor.u32 %v4208_v10, %v3624_v12  ;;  %v3304_v59 = vld [vmem:[#allocation5 + $0x478] sm:$0xf0]  ;;  %v4156_v12 = vld [vmem:[#allocation5 + $0x54c] sm:$0xf] }
  0xd0   :  { %1834 = vmatpush.bf16.msrb.mxu2 %v2939_v13  ;;  %1848 = vmatpush.bf16.msrb.mxu3 %v3067_v17  ;;  %v3003_v13 = vor.u32 %v4052_v62, %v3000_v63  ;;  %v4108_v17 = vld [vmem:[#allocation5 + $0x3cc] sm:$0xf]  ;;  %v3432_v61 = vld [vmem:[#allocation5 + $0x578] sm:$0xf0]  ;;  %v4618_v62 = vpop.f32.mrf.mxu0 }
  0xd1   :  { %1807 = vmatpush.bf16.msrb.mxu0 %v3559_v24  ;;  %v3480_v24 = vld [vmem:[#allocation5 + $0x5d8] sm:$0xf0]  ;;  %v3227_v27 = vor.u32 %v4108_v17, %v3224_v18  ;;  %v4192_v63 = vld [vmem:[#allocation5 + $0x66c] sm:$0xf]  ;;  %v4626_v47 = vpop.f32.mrf.mxu3 }
  0xd2   :  { %1821 = vmatpush.bf16.msrb.mxu1 %v2795_v25  ;;  %v4204_v25 = vld [vmem:[#allocation5 + $0x6cc] sm:$0xf]  ;;  %v3483_v29 = vor.u32 %v4172_v22, %v3480_v24  ;;  %v3288_v10 = vld [vmem:[#allocation5 + $0x458] sm:$0xf0]  ;;  %v4622_v22 = vpop.f32.mrf.mxu2 }
  0xd4   :  { %1835 = vmatpush.bf16.msrb.mxu2 %v2923_v26  ;;  %1849 = vmatpush.bf16.msrb.mxu3 %v3051_v30  ;;  %v3608_v26 = vld [vmem:[#allocation5 + $0x6d8] sm:$0xf0]  ;;  %v4104_v30 = vld [vmem:[#allocation5 + $0x3ac] sm:$0xf] }
  0xd5   :  { %1808 = vmatpush.bf16.msrb.mxu0 %v3543_v36  ;;  %v3611_v33 = vor.u32 %v4204_v25, %v3608_v26  ;;  %v3464_v36 = vld [vmem:[#allocation5 + $0x5b8] sm:$0xf0]  ;;  %v3211_v40 = vor.u32 %v4104_v30, %v3208_v31  ;;  %v4152_v26 = vld [vmem:[#allocation5 + $0x52c] sm:$0xf]  ;;  %v4624_v30 = vld [vmem:[#allocation7] sm:$0xf] }
  0xd6   :  { %1822 = vmatpush.bf16.msrb.mxu1 %v2779_v38  ;;  %v4200_v38 = vld [vmem:[#allocation5 + $0x6ac] sm:$0xf]  ;;  %v3467_v44 = vor.u32 %v4168_v35, %v3464_v36  ;;  %v3272_v25 = vld [vmem:[#allocation5 + $0x438] sm:$0xf0] }
  0xd7   :  { %v3275_v34 = vor.u32 %v4120_v21, %v3272_v25  ;;  %v3128_v36 = vld [vmem:[#allocation5 + $0x318] sm:$0xf0] }
  0xd8   :  { %1836 = vmatpush.bf16.msrb.mxu2 %v2907_v39  ;;  %1850 = vmatpush.bf16.msrb.mxu3 %v3035_v45  ;;  %v3592_v39 = vld [vmem:[#allocation5 + $0x6b8] sm:$0xf0]  ;;  %v4100_v45 = vld [vmem:[#allocation5 + $0x38c] sm:$0xf] }
  0xd9   :  { %1809 = vmatpush.bf16.msrb.mxu0 %v3527_v51  ;;  %v3595_v48 = vor.u32 %v4200_v38, %v3592_v39  ;;  %v4196_v51 = vld [vmem:[#allocation5 + $0x68c] sm:$0xf]  ;;  %v3256_v39 = vld [vmem:[#allocation5 + $0x418] sm:$0xf0] }
  0xda   :  { %1823 = vmatpush.bf16.msrb.mxu1 %v2763_v54  ;;  %v4096_v54 = vld [vmem:[#allocation5 + $0x36c] sm:$0xf]  ;;  %v3579_v58 = vor.u32 %v4196_v51, %v3576_v52  ;;  %v3750_v51 = vld [vmem:[#allocation8 + $0xf0] sm:$0xf]  ;;  %v4242_v52 = vld [vmem:[#allocation8 + $0xf4] sm:$0xf0] }
  0xdb   :  { %v4116_v38 = vld [vmem:[#allocation5 + $0x40c] sm:$0xf] }
  0xdc   :  { %1837 = vmatpush.bf16.msrb.mxu2 %v2891_v55  ;;  %1851 = vmatpush.bf16.msrb.mxu3 %v3019_v60  ;;  %v3176_v55 = vld [vmem:[#allocation5 + $0x378] sm:$0xf0]  ;;  %v4160_v60 = vld [vmem:[#allocation5 + $0x56c] sm:$0xf] }
  0xdd   :  { %1810 = vmatpush.bf16.msrb.mxu0 %v3511_v4  ;;  %v3179_v3 = vor.u32 %v4096_v54, %v3176_v55  ;;  %v3307_v4 = vor.u32 %v4128_v56, %v3304_v59  ;;  %v3435_v5 = vor.u32 %v4160_v60, %v3432_v61  ;;  %v3678_v56 = vld [vmem:[#allocation8 + $0x60] sm:$0xf]  ;;  %v3751_v59 = vor.u32 %v4242_v52, %v3750_v51  ;;  %v1562_v60 = vpop.f32.mrf.mxu2 }
  0xde   :  { %1824 = vmatpush.bf16.msrb.mxu1 %v2747_v8  ;;  %v4124_v8 = vld [vmem:[#allocation5 + $0x44c] sm:$0xf]  ;;  %v3742_v61 = vld [vmem:[#allocation8 + $0xe0] sm:$0xf]  ;;  %v360_v52 = vperm.slane %v4624_v30, 1 }
  0xdf   :  { %v3291_v17 = vor.u32 %v4124_v8, %v3288_v10  ;;  %v3734_v10 = vld [vmem:[#allocation8 + $0xd0] sm:$0xf] }
  0xe0   :  { %1838 = vmatpush.bf16.msrb.mxu2 %v2875_v9  ;;  %1852 = vmatpush.bf16.msrb.mxu3 %v3003_v13  ;;  %v3563_v9 = vor.u32 %v4192_v63, %v3560_v1  ;;  %v3416_v13 = vld [vmem:[#allocation5 + $0x558] sm:$0xf0]  ;;  %v4240_v63 = vld [vmem:[#allocation8 + $0xe4] sm:$0xf0] }
  0xe1   :  { %1859 = vmatpush.bf16.msra.mxu0 %v3243_v14  ;;  %1825 = vmatmul.bf16.vlgmr.msrb.gmra.mxu1 %v4580_v57  ;;  %v4188_v14 = vld [vmem:[#allocation5 + $0x64c] sm:$0xf]  ;;  %v3419_v18 = vor.u32 %v4156_v12, %v3416_v13  ;;  %v3743_v8 = vor.u32 %v4240_v63, %v3742_v61  ;;  %v3694_v61 = vld [vmem:[#allocation8 + $0x80] sm:$0xf] }
  0xe2   :  { %1873 = vmatpush.bf16.msra.mxu1 %v3371_v15  ;;  %1811 = vmatmul.bf16.vlgmr.msrb.gmra.mxu0 %v4594_v41  ;;  %v3544_v15 = vld [vmem:[#allocation5 + $0x658] sm:$0xf0]  ;;  %v4228_v63 = vld [vmem:[#allocation8 + $0x84] sm:$0xf0] }
  0xe3   :  { %1839 = vmatmul.bf16.vlgmr.msrb.gmra.mxu2 %v4586_v11  ;;  %1853 = vmatmul.bf16.vlgmr.msrb.gmra.mxu3 %v4582_v0  ;;  %v3448_v11 = vld [vmem:[#allocation5 + $0x598] sm:$0xf0]  ;;  %v3195_v0 = vor.u32 %v4100_v45, %v3192_v46  ;;  %v3547_v24 = vor.u32 %v4188_v14, %v3544_v15  ;;  %v4180_v46 = vld [vmem:[#allocation5 + $0x60c] sm:$0xf]  ;;  %v1576_v14 = vpop.f32.mrf.mxu3 }
  0xe4   :  { %1887 = vmatpush.bf16.msra.mxu2 %v3499_v16  ;;  %1901 = vmatpush.bf16.msra.mxu3 %v3627_v20  ;;  %v3451_v57 = vor.u32 %v4164_v50, %v3448_v11  ;;  %v3163_v16 = vor.u32 %v4092_v6, %v3160_v7  ;;  %v3144_v20 = vld [vmem:[#allocation5 + $0x338] sm:$0xf0]  ;;  %v3131_v11 = vor.u32 %v4084_v32, %v3128_v36  ;;  %v3670_v6 = vld [vmem:[#allocation8 + $0x50] sm:$0xf]  ;;  %v3710_v36 = vld [vmem:[#allocation8 + $0xa0] sm:$0xf] }
  0xe5   :  { %1860 = vmatpush.bf16.msra.mxu0 %v3227_v27  ;;  %v3400_v27 = vld [vmem:[#allocation5 + $0x538] sm:$0xf0]  ;;  %v3147_v31 = vor.u32 %v4088_v19, %v3144_v20  ;;  %v4236_v19 = vld [vmem:[#allocation8 + $0xc4] sm:$0xf0] }
  0xe6   :  { %1874 = vmatpush.bf16.msra.mxu1 %v3355_v28  ;;  %v4184_v28 = vld [vmem:[#allocation5 + $0x62c] sm:$0xf]  ;;  %v3403_v35 = vor.u32 %v4152_v26, %v3400_v27  ;;  %v3384_v45 = vld [vmem:[#allocation5 + $0x518] sm:$0xf0]  ;;  %v3718_v26 = vld [vmem:[#allocation8 + $0xb0] sm:$0xf] }
  0xe7   :  { %v4226_v50 = vld [vmem:[#allocation8 + $0x74] sm:$0xf0] }
  0xe8   :  { %1888 = vmatpush.bf16.msra.mxu2 %v3483_v29  ;;  %1902 = vmatpush.bf16.msra.mxu3 %v3611_v33  ;;  %v3528_v29 = vld [vmem:[#allocation5 + $0x638] sm:$0xf0]  ;;  %v1534_v33 = vpop.f32.mrf.mxu0  ;;  %v3687_v55 = vor.u32 %v4226_v50, %v3686_v49 }
  0xe9   :  { %1861 = vmatpush.bf16.msra.mxu0 %v3211_v40  ;;  %v1548_v40 = vpop.f32.mrf.mxu1  ;;  %v4222_v7 = vld [vmem:[#allocation8 + $0x54] sm:$0xf0] }
  0xea   :  { %1875 = vmatpush.bf16.msra.mxu1 %v3339_v43  ;;  %v3531_v43 = vor.u32 %v4184_v28, %v3528_v29  ;;  %v3671_v15 = vor.u32 %v4222_v7, %v3670_v6  ;;  %v4230_v49 = vld [vmem:[#allocation8 + $0x94] sm:$0xf0] }
  0xec   :  { %1889 = vmatpush.bf16.msra.mxu2 %v3467_v44  ;;  %1903 = vmatpush.bf16.msra.mxu3 %v3595_v48  ;;  %v4148_v44 = vld [vmem:[#allocation5 + $0x50c] sm:$0xf]  ;;  %v3512_v48 = vld [vmem:[#allocation5 + $0x618] sm:$0xf0] }
  0xed   :  { %1862 = vmatpush.bf16.msra.mxu0 %v3195_v0  ;;  %v359_v0 = vperm.slane %v4624_v30, 0  ;;  %v3515_v54 = vor.u32 %v4180_v46, %v3512_v48  ;;  %v3702_v48 = vld [vmem:[#allocation8 + $0x90] sm:$0xf] }
  0xee   :  { %1876 = vmatpush.bf16.msra.mxu1 %v3323_v53  ;;  %v3259_v53 = vor.u32 %v4116_v38, %v3256_v39  ;;  %v4232_v38 = vld [vmem:[#allocation8 + $0xa4] sm:$0xf0] }
  0xef   :  { %v1533_v1 = vadd.f32 %v4618_v62, %v359_v0  ;;  %v4238_v62 = vld [vmem:[#allocation8 + $0xd4] sm:$0xf0]  ;;  %v3711_v46 = vor.u32 %v4232_v38, %v3710_v36 }
  0xf0   :  { %1890 = vmatpush.bf16.msra.mxu2 %v3451_v57  ;;  %1904 = vmatpush.bf16.msra.mxu3 %v3579_v58  ;;  %v3387_v57 = vor.u32 %v4148_v44, %v3384_v45  ;;  %v4224_v58 = vld [vmem:[#allocation8 + $0x64] sm:$0xf0]  ;;  %v3638_v44 = vld [vmem:[#allocation8 + $0x10] sm:$0xf]  ;;  %v4214_v45 = vld [vmem:[#allocation8 + $0x14] sm:$0xf0] }
  0xf1   :  { %1863 = vmatpush.bf16.msra.mxu0 %v3179_v3  ;;  %v1535_v3 = vadd.f32 %v1534_v33, %v359_v0  ;;  %v1547_v12 = vadd.f32 %v4620_v2, %v1533_v1  ;;  %v4218_v2 = vld [vmem:[#allocation8 + $0x34] sm:$0xf0] }
  0xf2   :  { %1877 = vmatpush.bf16.msra.mxu1 %v3307_v4  ;;  %v3679_v4 = vor.u32 %v4224_v58, %v3678_v56  ;;  %v4212_v56 = vld [vmem:[#allocation8 + $0x4] sm:$0xf0]  ;;  %v4225_v58 = vld [vmem:[#allocation8 + $0x74] sm:$0xf] }
  0xf3   :  { %v1549_v13 = vadd.f32 %v1548_v40, %v1535_v3  ;;  %v4241_v3 = vld [vmem:[#allocation8 + $0xf4] sm:$0xf] }
  0xf4   :  { %1891 = vmatpush.bf16.msra.mxu2 %v3435_v5  ;;  %1905 = vmatpush.bf16.msra.mxu3 %v3563_v9  ;;  %v1588_v5 = vpop.f32.mrf.mxu0  ;;  %v1602_v9 = vpop.f32.mrf.mxu1 }
  0xf5   :  { %1864 = vmatpush.bf16.msra.mxu0 %v3163_v16  ;;  %v4220_v16 = vld [vmem:[#allocation8 + $0x44] sm:$0xf0]  ;;  %v1563_v20 = vadd.f32 %v1562_v60, %v1549_v13  ;;  %v3688_v60 = vld [vmem:[#allocation8 + $0x78] sm:$0xf0] }
  0xf6   :  { %1878 = vmatpush.bf16.msra.mxu1 %v3291_v17  ;;  %v3735_v17 = vor.u32 %v4238_v62, %v3734_v10  ;;  %v4223_v10 = vld [vmem:[#allocation8 + $0x64] sm:$0xf]  ;;  %v3680_v62 = vld [vmem:[#allocation8 + $0x68] sm:$0xf0] }
  0xf7   :  { %v1577_v28 = vadd.f32 %v1576_v14, %v1563_v20 }
  0xf8   :  { %1892 = vmatpush.bf16.msra.mxu2 %v3419_v18  ;;  %1906 = vmatpush.bf16.msra.mxu3 %v3547_v24  ;;  %v3726_v18 = vld [vmem:[#allocation8 + $0xc0] sm:$0xf]  ;;  %v3654_v24 = vld [vmem:[#allocation8 + $0x30] sm:$0xf] }
  0xf9   :  { %1865 = vmatpush.bf16.msra.mxu0 %v3147_v31  ;;  %v3727_v25 = vor.u32 %v4236_v19, %v3726_v18  ;;  %v1630_v31 = vpop.f32.mrf.mxu3  ;;  %v3655_v33 = vor.u32 %v4218_v2, %v3654_v24  ;;  %v3683_v19 = vor.u32 %v4223_v10, %v3680_v62  ;;  %v3640_v62 = vld [vmem:[#allocation8 + $0x18] sm:$0xf0] }
  0xfa   :  { %1879 = vmatpush.bf16.msra.mxu1 %v3275_v34  ;;  %v3646_v34 = vld [vmem:[#allocation8 + $0x20] sm:$0xf] }
  0xfc   :  { %1893 = vmatpush.bf16.msra.mxu2 %v3403_v35  ;;  %1907 = vmatpush.bf16.msra.mxu3 %v3531_v43  ;;  %v1590_v29 = vpop.f32.mrf.mxu0  ;;  %v1604_v32 = vpop.f32.mrf.mxu1 }
  0xfd   :  { %1866 = vmatpush.bf16.msra.mxu0 %v3131_v11  ;;  %v1591_v40 = vadd.f32 %v1590_v29, %v1577_v28  ;;  %v4219_v29 = vld [vmem:[#allocation8 + $0x44] sm:$0xf] }
  0xfe   :  { %1880 = vmatpush.bf16.msra.mxu1 %v3259_v53  ;;  %v3639_v53 = vor.u32 %v4214_v45, %v3638_v44  ;;  %v4217_v44 = vld [vmem:[#allocation8 + $0x34] sm:$0xf] }
  0xff   :  { %v1605_v11 = vadd.f32 %v1604_v32, %v1591_v40 }
 0x100   :  { %1894 = vmatpush.bf16.msra.mxu2 %v3387_v57  ;;  %1908 = vmatpush.bf16.msra.mxu3 %v3515_v54 }
 0x101   :  { %2317 = vmatpush.bf16.msrb.mxu0 %v3687_v55  ;;  %1881 = vmatmul.bf16.vlgmr.msra.gmra.mxu1 %v4592_v37  ;;  %v1561_v37 = vadd.f32 %v4622_v22, %v1547_v12  ;;  %v4216_v22 = vld [vmem:[#allocation8 + $0x24] sm:$0xf0]  ;;  %v1632_v54 = vpop.f32.mrf.mxu3  ;;  %v3630_v55 = vld [vmem:[#allocation8] sm:$0xf] }
 0x102   :  { %1867 = vmatmul.bf16.vlgmr.msra.gmra.mxu0 %v4589_v23  ;;  %2331 = vmatpush.bf16.msrb.mxu1 %v3751_v59  ;;  %v3662_v23 = vld [vmem:[#allocation8 + $0x40] sm:$0xf]  ;;  %v3647_v43 = vor.u32 %v4216_v22, %v3646_v34  ;;  %v3703_v59 = vor.u32 %v4230_v49, %v3702_v48  ;;  %v3631_v6 = vor.u32 %v4212_v56, %v3630_v55  ;;  %v3728_v34 = vld [vmem:[#allocation8 + $0xc8] sm:$0xf0]  ;;  %v3814_v22 = vld [vmem:[#allocation8 + $0x170] sm:$0xf] }
 0x103   :  { %1895 = vmatmul.bf16.vlgmr.msra.gmra.mxu2 %v4596_v42  ;;  %1909 = vmatmul.bf16.vlgmr.msra.gmra.mxu3 %v4594_v41  ;;  %v1616_v42 = vpop.f32.mrf.mxu2  ;;  %v3663_v21 = vor.u32 %v4220_v16, %v3662_v23  ;;  %v4234_v41 = vld [vmem:[#allocation8 + $0xb4] sm:$0xf0]  ;;  %v1575_v27 = vadd.f32 %v4626_v47, %v1561_v37  ;;  %v3744_v23 = vld [vmem:[#allocation8 + $0xe8] sm:$0xf0]  ;;  %v1633_v37 = vadd.f32 %v1632_v54, %v360_v52  ;;  %v3806_v49 = vld [vmem:[#allocation8 + $0x160] sm:$0xf] }
 0x104   :  { %v3719_v35 = vor.u32 %v4234_v41, %v3718_v26  ;;  %v1644_v51 = vpop.f32.mrf.mxu0  ;;  %v1658_v0 = vpop.f32.mrf.mxu1  ;;  %v3736_v26 = vld [vmem:[#allocation8 + $0xd8] sm:$0xf0]  ;;  %v4215_v56 = vld [vmem:[#allocation8 + $0x24] sm:$0xf] }
 0x105   :  { %2318 = vmatpush.bf16.msrb.mxu0 %v3679_v4  ;;  %v1589_v39 = vadd.f32 %v1588_v5, %v1575_v27  ;;  %v3752_v4 = vld [vmem:[#allocation8 + $0xf8] sm:$0xf0]  ;;  %v1631_v5 = vadd.f32 %v1630_v31, %v360_v52  ;;  %v3664_v31 = vld [vmem:[#allocation8 + $0x48] sm:$0xf0] }
 0x106   :  { %2332 = vmatpush.bf16.msrb.mxu1 %v3743_v8  ;;  %v3691_v8 = vor.u32 %v4225_v58, %v3688_v60  ;;  %v3755_v12 = vor.u32 %v4241_v3, %v3752_v4  ;;  %v3648_v58 = vld [vmem:[#allocation8 + $0x28] sm:$0xf0]  ;;  %v4231_v60 = vld [vmem:[#allocation8 + $0xa4] sm:$0xf] }
 0x107   :  { %v1603_v50 = vadd.f32 %v1602_v9, %v1589_v39  ;;  %v3695_v9 = vor.u32 %v4228_v63, %v3694_v61  ;;  %v1645_v16 = vadd.f32 %v1644_v51, %v1631_v5  ;;  %v3720_v51 = vld [vmem:[#allocation8 + $0xb8] sm:$0xf0]  ;;  %v3712_v61 = vld [vmem:[#allocation8 + $0xa8] sm:$0xf0]  ;;  %v3798_v63 = vld [vmem:[#allocation8 + $0x150] sm:$0xf] }
 0x109   :  { %2319 = vmatpush.bf16.msrb.mxu0 %v3671_v15  ;;  %v1617_v1 = vadd.f32 %v1616_v42, %v1603_v50  ;;  %v4239_v15 = vld [vmem:[#allocation8 + $0xe4] sm:$0xf]  ;;  %v4221_v42 = vld [vmem:[#allocation8 + $0x54] sm:$0xf]  ;;  %v1686_v2 = vpop.f32.mrf.mxu3  ;;  %v1659_v41 = vadd.f32 %v1658_v0, %v1645_v16  ;;  %v4256_v50 = vld [vmem:[#allocation8 + $0x164] sm:$0xf0] }
 0x10a   :  { %2333 = vmatpush.bf16.msrb.mxu1 %v3735_v17  ;;  %v3747_v24 = vor.u32 %v4239_v15, %v3744_v23  ;;  %v3807_v52 = vor.u32 %v4256_v50, %v3806_v49  ;;  %v4229_v16 = vld [vmem:[#allocation8 + $0x94] sm:$0xf] }
 0x10b   :  { %v1618_v47 = vpop.f32.mrf.mxu2  ;;  %v1915_v13 = vmax.f32 %v1617_v1, 0.0  ;;  %v4254_v1 = vld [vmem:[#allocation8 + $0x154] sm:$0xf0] }
 0x10c   :  { %v1619_v57 = vadd.f32 %v1618_v47, %v1605_v11  ;;  %v1646_v18 = vpop.f32.mrf.mxu0  ;;  %v1660_v20 = vpop.f32.mrf.mxu1  ;;  %v3656_v47 = vld [vmem:[#allocation8 + $0x38] sm:$0xf0]  ;;  %v4233_v11 = vld [vmem:[#allocation8 + $0xb4] sm:$0xf]  ;;  %v3799_v4 = vor.u32 %v4254_v1, %v3798_v63  ;;  %v3862_v1 = vld [vmem:[#allocation8 + $0x1d0] sm:$0xf] }
 0x10d   :  { %2320 = vmatpush.bf16.msrb.mxu0 %v3663_v21  ;;  %v3672_v21 = vld [vmem:[#allocation8 + $0x58] sm:$0xf0]  ;;  %v1647_v28 = vadd.f32 %v1646_v18, %v1633_v37  ;;  %v3659_v54 = vor.u32 %v4217_v44, %v3656_v47  ;;  %v4255_v47 = vld [vmem:[#allocation8 + $0x164] sm:$0xf] }
 0x10e   :  { %2334 = vmatpush.bf16.msrb.mxu1 %v3727_v25  ;;  %v1919_v7 = vmax.f32 %v1619_v57, 0.0  ;;  %v4237_v25 = vld [vmem:[#allocation8 + $0xd4] sm:$0xf]  ;;  %v3675_v27 = vor.u32 %v4221_v42, %v3672_v21  ;;  %v3704_v18 = vld [vmem:[#allocation8 + $0x98] sm:$0xf0] }
 0x10f   :  { %v3739_v32 = vor.u32 %v4237_v25, %v3736_v26  ;;  %v1661_v45 = vadd.f32 %v1660_v20, %v1647_v28  ;;  %v4211_v42 = vld [vmem:[#allocation8 + $0x4] sm:$0xf]  ;;  %v3632_v21 = vld [vmem:[#allocation8 + $0x8] sm:$0xf0]  ;;  %v4250_v25 = vld [vmem:[#allocation8 + $0x134] sm:$0xf0] }
 0x110   :  { %v4638_v17 = vpack.c.bf16 %v1919_v7, %v1915_v13  ;;  %v4213_v7 = vld [vmem:[#allocation8 + $0x14] sm:$0xf]  ;;  %v3790_v13 = vld [vmem:[#allocation8 + $0x140] sm:$0xf]  ;;  %v3816_v44 = vld [vmem:[#allocation8 + $0x178] sm:$0xf0] }
 0x111   :  { %2321 = vmatpush.bf16.msrb.mxu0 %v3655_v33  ;;  %v4235_v33 = vld [vmem:[#allocation8 + $0xc4] sm:$0xf]  ;;  %v1688_v57 = vpop.f32.mrf.mxu3 }
 0x112   :  { %2335 = vmatpush.bf16.msrb.mxu1 %v3719_v35  ;;  %v4258_v35 = vld [vmem:[#allocation8 + $0x174] sm:$0xf0]  ;;  %v3731_v48 = vor.u32 %v4235_v33, %v3728_v34 }
 0x113   :  { %v1672_v14 = vpop.f32.mrf.mxu2  ;;  %v3815_v38 = vor.u32 %v4258_v35, %v3814_v22  ;;  %v3766_v22 = vld [vmem:[#allocation8 + $0x110] sm:$0xf]  ;;  %v4246_v35 = vld [vmem:[#allocation8 + $0x114] sm:$0xf0] }
 0x114   :  { %v1673_v36 = vadd.f32 %v1672_v14, %v1659_v41  ;;  %v4252_v14 = vld [vmem:[#allocation8 + $0x144] sm:$0xf0]  ;;  %v4227_v41 = vld [vmem:[#allocation8 + $0x84] sm:$0xf] }
 0x115   :  { %2322 = vmatpush.bf16.msrb.mxu0 %v3647_v43  ;;  %v3667_v43 = vor.u32 %v4219_v29, %v3664_v31  ;;  %2345 = vmatpush.bf16.msrb.mxu2 %v3815_v38  ;;  %v3791_v15 = vor.u32 %v4252_v14, %v3790_v13  ;;  %v3635_v29 = vor.u32 %v4211_v42, %v3632_v21  ;;  %v3774_v31 = vld [vmem:[#allocation8 + $0x120] sm:$0xf]  ;;  %v3776_v13 = vld [vmem:[#allocation8 + $0x128] sm:$0xf0] }
 0x116   :  { %2336 = vmatpush.bf16.msrb.mxu1 %v3711_v46  ;;  %v1687_v0 = vadd.f32 %v1686_v2, %v1673_v36  ;;  %v3782_v2 = vld [vmem:[#allocation8 + $0x130] sm:$0xf]  ;;  %v3767_v36 = vor.u32 %v4246_v35, %v3766_v22  ;;  %v3758_v38 = vld [vmem:[#allocation8 + $0x100] sm:$0xf] }
 0x117   :  { %v3783_v28 = vor.u32 %v4250_v25, %v3782_v2  ;;  %v3838_v25 = vld [vmem:[#allocation8 + $0x1a0] sm:$0xf] }
 0x119   :  { %2323 = vmatpush.bf16.msrb.mxu0 %v3639_v53  ;;  %2346 = vmatpush.bf16.msrb.mxu2 %v3807_v52  ;;  %v4253_v52 = vld [vmem:[#allocation8 + $0x154] sm:$0xf] }
 0x11a   :  { %2337 = vmatpush.bf16.msrb.mxu1 %v3703_v59  ;;  %v3723_v59 = vor.u32 %v4233_v11, %v3720_v51  ;;  %v3878_v11 = vld [vmem:[#allocation8 + $0x1f0] sm:$0xf]  ;;  %v4274_v51 = vld [vmem:[#allocation8 + $0x1f4] sm:$0xf0] }
 0x11b   :  { %v1674_v39 = vpop.f32.mrf.mxu2 }
 0x11c   :  { %v1675_v53 = vadd.f32 %v1674_v39, %v1661_v45  ;;  %v4244_v39 = vld [vmem:[#allocation8 + $0x104] sm:$0xf0] }
 0x11d   :  { %2324 = vmatpush.bf16.msrb.mxu0 %v3631_v6  ;;  %v3651_v6 = vor.u32 %v4215_v56, %v3648_v58  ;;  %2347 = vmatpush.bf16.msrb.mxu2 %v3799_v4  ;;  %v4249_v4 = vld [vmem:[#allocation8 + $0x134] sm:$0xf] }
 0x11e   :  { %2338 = vmatpush.bf16.msrb.mxu1 %v3695_v9  ;;  %v1714_v46 = vpop.f32.mrf.mxu1  ;;  %v1689_v3 = vadd.f32 %v1688_v57, %v1675_v53  ;;  %v3800_v53 = vld [vmem:[#allocation8 + $0x158] sm:$0xf0]  ;;  %v3870_v57 = vld [vmem:[#allocation8 + $0x1e0] sm:$0xf] }
 0x11f   :  { %v1700_v40 = vpop.f32.mrf.mxu0 }
 0x120   :  { %2325 = vmatmul.bf16.vlgmr.msrb.gmra.mxu0 %v4638_v17  ;;  %v1701_v55 = vadd.f32 %v1700_v40, %v1687_v0  ;;  %v3759_v40 = vor.u32 %v4244_v39, %v3758_v38  ;;  %v3879_v0 = vor.u32 %v4274_v51, %v3878_v11  ;;  %v3830_v38 = vld [vmem:[#allocation8 + $0x190] sm:$0xf]  ;;  %v4262_v39 = vld [vmem:[#allocation8 + $0x194] sm:$0xf0]  ;;  %v4273_v51 = vld [vmem:[#allocation8 + $0x1f4] sm:$0xf] }
 0x121   :  { %2373 = vmatpush.bf16.msra.mxu0 %v3691_v8  ;;  %2348 = vmatpush.bf16.msrb.mxu2 %v3791_v15 }
 0x122   :  { %2387 = vmatpush.bf16.msra.mxu1 %v3755_v12  ;;  %v1715_v8 = vadd.f32 %v1714_v46, %v1701_v55  ;;  %v3715_v12 = vor.u32 %v4231_v60, %v3712_v61  ;;  %2359 = vmatpush.bf16.msrb.mxu3 %v3879_v0  ;;  %v4251_v55 = vld [vmem:[#allocation8 + $0x144] sm:$0xf]  ;;  %v361_v60 = vperm.slane %v4624_v30, 2 }
 0x124   :  { %v1916_v37 = vmax.f32 %v1715_v8, 0.0  ;;  %v3854_v8 = vld [vmem:[#allocation8 + $0x1c0] sm:$0xf] }
 0x125   :  { %2374 = vmatpush.bf16.msra.mxu0 %v3683_v19  ;;  %v3643_v19 = vor.u32 %v4213_v7, %v3640_v62  ;;  %2349 = vmatpush.bf16.msrb.mxu2 %v3783_v28  ;;  %v3784_v7 = vld [vmem:[#allocation8 + $0x138] sm:$0xf0]  ;;  %v3760_v28 = vld [vmem:[#allocation8 + $0x108] sm:$0xf0] }
 0x126   :  { %2388 = vmatpush.bf16.msra.mxu1 %v3747_v24  ;;  %v1716_v10 = vpop.f32.mrf.mxu1  ;;  %v3707_v24 = vor.u32 %v4229_v16, %v3704_v18  ;;  %v1728_v46 = vpop.f32.mrf.mxu2  ;;  %v3787_v62 = vor.u32 %v4249_v4, %v3784_v7  ;;  %v4266_v16 = vld [vmem:[#allocation8 + $0x1b4] sm:$0xf0]  ;;  %v3856_v7 = vld [vmem:[#allocation8 + $0x1c8] sm:$0xf0] }
 0x127   :  { %v1702_v5 = vpop.f32.mrf.mxu0  ;;  %v1742_v50 = vpop.f32.mrf.mxu3 }
 0x128   :  { %v1703_v9 = vadd.f32 %v1702_v5, %v1689_v3  ;;  %v4270_v3 = vld [vmem:[#allocation8 + $0x1d4] sm:$0xf0] }
 0x129   :  { %2375 = vmatpush.bf16.msra.mxu0 %v3675_v27  ;;  %v3696_v27 = vld [vmem:[#allocation8 + $0x88] sm:$0xf0] }
 0x12a   :  { %2389 = vmatpush.bf16.msra.mxu1 %v3739_v32  ;;  %v1717_v23 = vadd.f32 %v1716_v10, %v1703_v9  ;;  %v4248_v32 = vld [vmem:[#allocation8 + $0x124] sm:$0xf0]  ;;  %v3699_v34 = vor.u32 %v4227_v41, %v3696_v27  ;;  %v1729_v10 = vadd.f32 %v1728_v46, %v361_v60  ;;  %v4243_v27 = vld [vmem:[#allocation8 + $0x104] sm:$0xf] }
 0x12b   :  { %v3775_v33 = vor.u32 %v4248_v32, %v3774_v31  ;;  %v4268_v9 = vld [vmem:[#allocation8 + $0x1c4] sm:$0xf0] }
 0x12c   :  { %v1920_v20 = vmax.f32 %v1717_v23, 0.0  ;;  %v3855_v14 = vor.u32 %v4268_v9, %v3854_v8  ;;  %v3846_v23 = vld [vmem:[#allocation8 + $0x1b0] sm:$0xf] }
 0x12d   :  { %2376 = vmatpush.bf16.msra.mxu0 %v3667_v43  ;;  %2350 = vmatpush.bf16.msrb.mxu2 %v3775_v33  ;;  %v4257_v43 = vld [vmem:[#allocation8 + $0x174] sm:$0xf] }
 0x12e   :  { %2390 = vmatpush.bf16.msra.mxu1 %v3731_v48  ;;  %v1924_v26 = vpack.c.bf16 %v1920_v20, %v1916_v37  ;;  %v3819_v45 = vor.u32 %v4257_v43, %v3816_v44  ;;  %v3808_v48 = vld [vmem:[#allocation8 + $0x168] sm:$0xf0]  ;;  %v1730_v56 = vpop.f32.mrf.mxu2  ;;  %v3768_v37 = vld [vmem:[#allocation8 + $0x118] sm:$0xf0]  ;;  %v1743_v20 = vadd.f32 %v1742_v50, %v1729_v10  ;;  %v3831_v44 = vor.u32 %v4262_v39, %v3830_v38 }
 0x12f   :  { %v3811_v49 = vor.u32 %v4255_v47, %v3808_v48  ;;  %v1744_v5 = vpop.f32.mrf.mxu3  ;;  %v1731_v42 = vadd.f32 %v1730_v56, %v361_v60  ;;  %v3822_v48 = vld [vmem:[#allocation8 + $0x180] sm:$0xf]  ;;  %v3872_v56 = vld [vmem:[#allocation8 + $0x1e8] sm:$0xf0] }
 0x130   :  { %2339 = vmatmul.bf16.vlgmr.msrb.gmra.mxu1 %v1924_v26 }
 0x131   :  { %2377 = vmatpush.bf16.msra.mxu0 %v3659_v54  ;;  %2351 = vmatpush.bf16.msrb.mxu2 %v3767_v36  ;;  %v4272_v54 = vld [vmem:[#allocation8 + $0x1e4] sm:$0xf0] }
 0x132   :  { %2391 = vmatpush.bf16.msra.mxu1 %v3723_v59  ;;  %v3871_v58 = vor.u32 %v4272_v54, %v3870_v57  ;;  %v3792_v59 = vld [vmem:[#allocation8 + $0x148] sm:$0xf0] }
 0x133   :  { %v3795_v61 = vor.u32 %v4251_v55, %v3792_v59  ;;  %v4271_v55 = vld [vmem:[#allocation8 + $0x1e4] sm:$0xf] }
 0x134   :  { %2360 = vmatpush.bf16.msrb.mxu3 %v3871_v58  ;;  %v3875_v59 = vor.u32 %v4271_v55, %v3872_v56  ;;  %v4289_v55 = vld [vmem:[#allocation10 + $0x70] sm:$0xff]  ;;  %v4276_v56 = vld [vmem:[#allocation10 + $0x8] sm:$0xff] }
 0x135   :  { %2378 = vmatpush.bf16.msra.mxu0 %v3651_v6  ;;  %2352 = vmatpush.bf16.msrb.mxu2 %v3759_v40  ;;  %v3863_v6 = vor.u32 %v4270_v3, %v3862_v1  ;;  %v3864_v1 = vld [vmem:[#allocation8 + $0x1d8] sm:$0xf0] }
 0x136   :  { %2392 = vmatpush.bf16.msra.mxu1 %v3715_v12  ;;  %v4247_v12 = vld [vmem:[#allocation8 + $0x124] sm:$0xf] }
 0x137   :  { %v3779_v15 = vor.u32 %v4247_v12, %v3776_v13  ;;  %v3848_v12 = vld [vmem:[#allocation8 + $0x1b8] sm:$0xf0]  ;;  %v362_v13 = vperm.slane %v4624_v30, 3 }
 0x138   :  { %2361 = vmatpush.bf16.msrb.mxu3 %v3863_v6  ;;  %v4267_v6 = vld [vmem:[#allocation8 + $0x1c4] sm:$0xf] }
 0x139   :  { %2379 = vmatpush.bf16.msra.mxu0 %v3643_v19  ;;  %2401 = vmatpush.bf16.msra.mxu2 %v3819_v45  ;;  %v4245_v19 = vld [vmem:[#allocation8 + $0x114] sm:$0xf]  ;;  %v3859_v8 = vor.u32 %v4267_v6, %v3856_v7  ;;  %v1991_v6 = vld [vmem:[%s4663_s4] sm:$0x3] }
 0x13a   :  { %2393 = vmatpush.bf16.msra.mxu1 %v3707_v24  ;;  %v3847_v24 = vor.u32 %v4266_v16, %v3846_v23  ;;  %v3771_v2 = vor.u32 %v4245_v19, %v3768_v37  ;;  %v3840_v23 = vld [vmem:[#allocation8 + $0x1a8] sm:$0xf0]  ;;  %v4283_v7 = vld [vmem:[#allocation10 + $0x40] sm:$0xff] }
 0x13c   :  { %2362 = vmatpush.bf16.msrb.mxu3 %v3855_v14 }
 0x13d   :  { %2380 = vmatpush.bf16.msra.mxu0 %v3635_v29  ;;  %2402 = vmatpush.bf16.msra.mxu2 %v3811_v49  ;;  %v1745_v29 = vadd.f32 %v1744_v5, %v1731_v42  ;;  %v4260_v49 = vld [vmem:[#allocation8 + $0x184] sm:$0xf0]  ;;  %v3832_v42 = vld [vmem:[#allocation8 + $0x198] sm:$0xf0] }
 0x13e   :  { %2394 = vmatpush.bf16.msra.mxu1 %v3699_v34  ;;  %v1770_v18 = vpop.f32.mrf.mxu1  ;;  %v3763_v34 = vor.u32 %v4243_v27, %v3760_v28  ;;  %v3823_v11 = vor.u32 %v4260_v49, %v3822_v48  ;;  %v3824_v27 = vld [vmem:[#allocation8 + $0x188] sm:$0xf0] }
 0x13f   :  { %v1756_v63 = vpop.f32.mrf.mxu0 }
 0x140   :  { %2381 = vmatmul.bf16.vlgmr.msra.gmra.mxu0 %v4638_v17  ;;  %v3803_v17 = vor.u32 %v4253_v52, %v3800_v53  ;;  %v1757_v31 = vadd.f32 %v1756_v63, %v1743_v20  ;;  %2363 = vmatpush.bf16.msrb.mxu3 %v3847_v24  ;;  %v3880_v52 = vld [vmem:[#allocation8 + $0x1f8] sm:$0xf0]  ;;  %v4269_v63 = vld [vmem:[#allocation8 + $0x1d4] sm:$0xf] }
 0x141   :  { %2395 = vmatmul.bf16.vlgmr.msra.gmra.mxu1 %v1924_v26  ;;  %v4264_v26 = vld [vmem:[#allocation8 + $0x1a4] sm:$0xf0]  ;;  %v3883_v53 = vor.u32 %v4273_v51, %v3880_v52  ;;  %v3867_v4 = vor.u32 %v4269_v63, %v3864_v1  ;;  %v4261_v20 = vld [vmem:[#allocation8 + $0x194] sm:$0xf]  ;;  %v4282_v51 = vld [vmem:[#allocation10 + $0x38] sm:$0xff] }
 0x142   :  { %2403 = vmatpush.bf16.msra.mxu2 %v3803_v17  ;;  %v3839_v33 = vor.u32 %v4264_v26, %v3838_v25  ;;  %v1771_v22 = vadd.f32 %v1770_v18, %v1757_v31  ;;  %2567 = vmatpush.bf16.msrb.mxu0 %v4282_v51  ;;  %v4281_v52 = vld [vmem:[#allocation10 + $0x30] sm:$0xff]  ;;  %v4291_v51 = vld [vmem:[#allocation11] sm:$0xff] }
 0x143   :  { %v4285_v63 = vld [vmem:[#allocation10 + $0x50] sm:$0xff] }
 0x144   :  { %2364 = vmatpush.bf16.msrb.mxu3 %v3839_v33 }
 0x146   :  { %2404 = vmatpush.bf16.msra.mxu2 %v3795_v61  ;;  %v1784_v21 = vpop.f32.mrf.mxu2  ;;  %v1798_v32 = vpop.f32.mrf.mxu3  ;;  %2568 = vmatpush.bf16.msrb.mxu0 %v4281_v52 }
 0x147   :  { %v1758_v41 = vpop.f32.mrf.mxu0  ;;  %v1772_v36 = vpop.f32.mrf.mxu1  ;;  %v1785_v45 = vadd.f32 %v1784_v21, %v1771_v22  ;;  %v4259_v21 = vld [vmem:[#allocation8 + $0x184] sm:$0xf] }
 0x148   :  { %v1759_v35 = vadd.f32 %v1758_v41, %v1745_v29  ;;  %2365 = vmatpush.bf16.msrb.mxu3 %v3831_v44  ;;  %v3835_v41 = vor.u32 %v4261_v20, %v3832_v42  ;;  %v3827_v30 = vor.u32 %v4259_v21, %v3824_v27 }
 0x149   :  { %v1799_v0 = vadd.f32 %v1798_v32, %v1785_v45 }
 0x14a   :  { %2405 = vmatpush.bf16.msra.mxu2 %v3787_v62  ;;  %v1773_v46 = vadd.f32 %v1772_v36, %v1759_v35  ;;  %v4265_v62 = vld [vmem:[#allocation8 + $0x1b4] sm:$0xf] }
 0x14b   :  { %v3851_v14 = vor.u32 %v4265_v62, %v3848_v12 }
 0x14c   :  { %2366 = vmatpush.bf16.msrb.mxu3 %v3823_v11 }
 0x14e   :  { %2406 = vmatpush.bf16.msra.mxu2 %v3779_v15  ;;  %v1786_v40 = vpop.f32.mrf.mxu2  ;;  %v1800_v50 = vpop.f32.mrf.mxu3  ;;  %v4263_v15 = vld [vmem:[#allocation8 + $0x1a4] sm:$0xf] }
 0x14f   :  { %v1787_v47 = vadd.f32 %v1786_v40, %v1773_v46  ;;  %v3843_v16 = vor.u32 %v4263_v15, %v3840_v23 }
 0x150   :  { %2415 = vmatpush.bf16.msra.mxu3 %v3883_v53  ;;  %v4279_v53 = vld [vmem:[#allocation10 + $0x20] sm:$0xff] }
 0x151   :  { %v1801_v17 = vadd.f32 %v1800_v50, %v1787_v47 }
 0x152   :  { %2407 = vmatpush.bf16.msra.mxu2 %v3771_v2 }
 0x154   :  { %2416 = vmatpush.bf16.msra.mxu3 %v3875_v59  ;;  %v4275_v59 = vld [vmem:[#allocation10] sm:$0xff] }
 0x156   :  { %2408 = vmatpush.bf16.msra.mxu2 %v3763_v34 }
 0x158   :  { %2417 = vmatpush.bf16.msra.mxu3 %v3867_v4 }
 0x15c   :  { %2418 = vmatpush.bf16.msra.mxu3 %v3859_v8  ;;  %v1993_v8 = vperm.slane %v1991_v6, 0 }
 0x15e   :  { %v1826_v5 = vpop.f32.mrf.mxu1 }
 0x15f   :  { %v1812_v43 = vpop.f32.mrf.mxu0  ;;  %v1827_v19 = vadd.f32 %v1826_v5, %v362_v13  ;;  %v4284_v5 = vld [vmem:[#allocation10 + $0x48] sm:$0xff] }
 0x160   :  { %v1813_v57 = vadd.f32 %v1812_v43, %v1799_v0  ;;  %2419 = vmatpush.bf16.msra.mxu3 %v3851_v14  ;;  %v4280_v0 = vld [vmem:[#allocation10 + $0x28] sm:$0xff] }
 0x161   :  { %2569 = vmatpush.bf16.msrb.mxu0 %v4280_v0 }
 0x162   :  { %v1917_v60 = vmax.f32 %v1813_v57, 0.0  ;;  %v4290_v57 = vld [vmem:[#allocation10 + $0x78] sm:$0xff] }
 0x163   :  { %2581 = vmatpush.bf16.msrb.mxu1 %v4290_v57 }
 0x164   :  { %2420 = vmatpush.bf16.msra.mxu3 %v3843_v16 }
 0x165   :  { %2570 = vmatpush.bf16.msrb.mxu0 %v4279_v53  ;;  %v4314_v53 = vld [vmem:[%s4665_s6] ss:$0 sm:$0xff] }
 0x166   :  { %v1840_v9 = vpop.f32.mrf.mxu2  ;;  %v1854_v10 = vpop.f32.mrf.mxu3 }
 0x167   :  { %v1814_v54 = vpop.f32.mrf.mxu0  ;;  %v1828_v18 = vpop.f32.mrf.mxu1  ;;  %v1841_v24 = vadd.f32 %v1840_v9, %v1827_v19  ;;  %2582 = vmatpush.bf16.msrb.mxu1 %v4289_v55 }
 0x168   :  { %v1815_v58 = vadd.f32 %v1814_v54, %v1801_v17  ;;  %v1829_v2 = vadd.f32 %v1828_v18, %v362_v13  ;;  %2421 = vmatpush.bf16.msra.mxu3 %v3835_v41  ;;  %v4278_v17 = vld [vmem:[#allocation10 + $0x18] sm:$0xff]  ;;  %v4277_v54 = vld [vmem:[#allocation10 + $0x10] sm:$0xff] }
 0x169   :  { %v1855_v29 = vadd.f32 %v1854_v10, %v1841_v24  ;;  %2571 = vmatpush.bf16.msrb.mxu0 %v4278_v17 }
 0x16a   :  { %v1921_v61 = vmax.f32 %v1815_v58, 0.0  ;;  %v4288_v58 = vld [vmem:[#allocation10 + $0x68] sm:$0xff] }
 0x16b   :  { %2583 = vmatpush.bf16.msrb.mxu1 %v4288_v58 }
 0x16c   :  { %v1925_v3 = vpack.c.bf16 %v1921_v61, %v1917_v60  ;;  %2422 = vmatpush.bf16.msra.mxu3 %v3827_v30  ;;  %v4287_v60 = vld [vmem:[#allocation10 + $0x60] sm:$0xff]  ;;  %v4286_v61 = vld [vmem:[#allocation10 + $0x58] sm:$0xff] }
 0x16d   :  { %2572 = vmatpush.bf16.msrb.mxu0 %v4277_v54 }
 0x16e   :  { %2353 = vmatmul.bf16.vlgmr.msrb.gmra.mxu2 %v1925_v3  ;;  %v1842_v37 = vpop.f32.mrf.mxu2  ;;  %v1856_v25 = vpop.f32.mrf.mxu3 }
 0x16f   :  { %v1843_v31 = vadd.f32 %v1842_v37, %v1829_v2  ;;  %2584 = vmatpush.bf16.msrb.mxu1 %v4287_v60 }
 0x171   :  { %v1857_v34 = vadd.f32 %v1856_v25, %v1843_v31  ;;  %2573 = vmatpush.bf16.msrb.mxu0 %v4276_v56 }
 0x173   :  { %2585 = vmatpush.bf16.msrb.mxu1 %v4286_v61 }
 0x175   :  { %2574 = vmatpush.bf16.msrb.mxu0 %v4275_v59 }
 0x177   :  { %2586 = vmatpush.bf16.msrb.mxu1 %v4285_v63  ;;  %v4315_v63 = vld [vmem:[%s4667_s8] ss:$0 sm:$0xff] }
 0x17b   :  { %2587 = vmatpush.bf16.msrb.mxu1 %v4284_v5 }
 0x17e   :  { %2409 = vmatmul.bf16.vlgmr.msra.gmra.mxu2 %v1925_v3  ;;  %v1882_v28 = vpop.f32.mrf.mxu1 }
 0x17f   :  { %v1868_v26 = vpop.f32.mrf.mxu0  ;;  %2588 = vmatpush.bf16.msrb.mxu1 %v4283_v7 }
 0x180   :  { %v1869_v32 = vadd.f32 %v1868_v26, %v1855_v29  ;;  %v1994_v26 = vperm.slane %v1991_v6, 1 }
 0x182   :  { %v1883_v36 = vadd.f32 %v1882_v28, %v1869_v32 }
 0x186   :  { %v1896_v33 = vpop.f32.mrf.mxu2  ;;  %v1910_v22 = vpop.f32.mrf.mxu3 }
 0x187   :  { %v1870_v35 = vpop.f32.mrf.mxu0  ;;  %v1897_v39 = vadd.f32 %v1896_v33, %v1883_v36  ;;  %v1884_v40 = vpop.f32.mrf.mxu1 }
 0x188   :  { %v1871_v38 = vadd.f32 %v1870_v35, %v1857_v34 }
 0x189   :  { %v1911_v45 = vadd.f32 %v1910_v22, %v1897_v39 }
 0x18a   :  { %v1885_v43 = vadd.f32 %v1884_v40, %v1871_v38 }
 0x18b   :  { %v1918_v49 = vmax.f32 %v1911_v45, 0.0  ;;  %v4298_v45 = vld [vmem:[#allocation11 + $0x38] sm:$0xff] }
 0x18c   :  { %2666 = vmatpush.bf16.msrb.mxu2 %v4298_v45 }
 0x18e   :  { %v1898_v44 = vpop.f32.mrf.mxu2  ;;  %v1912_v47 = vpop.f32.mrf.mxu3 }
 0x18f   :  { %v1899_v46 = vadd.f32 %v1898_v44, %v1885_v43 }
 0x191   :  { %v1913_v48 = vadd.f32 %v1912_v47, %v1899_v46  ;;  %v4297_v46 = vld [vmem:[#allocation11 + $0x30] sm:$0xff]  ;;  %v4296_v47 = vld [vmem:[#allocation11 + $0x28] sm:$0xff] }
 0x192   :  { %2667 = vmatpush.bf16.msrb.mxu2 %v4297_v46 }
 0x193   :  { %v1922_v50 = vmax.f32 %v1913_v48, 0.0  ;;  %v4295_v48 = vld [vmem:[#allocation11 + $0x20] sm:$0xff] }
 0x195   :  { %v1926_v11 = vpack.c.bf16 %v1922_v50, %v1918_v49  ;;  %v4294_v49 = vld [vmem:[#allocation11 + $0x18] sm:$0xff]  ;;  %v4293_v50 = vld [vmem:[#allocation11 + $0x10] sm:$0xff] }
 0x196   :  { %2668 = vmatpush.bf16.msrb.mxu2 %v4296_v47 }
 0x197   :  { %2367 = vmatmul.bf16.vlgmr.msrb.gmra.mxu3 %v1926_v11 }
 0x19a   :  { %2669 = vmatpush.bf16.msrb.mxu2 %v4295_v48 }
 0x19d   :  { %v2326_v1 = vpop.f32.mrf.mxu0 }
 0x19e   :  { %v2327_v13 = vadd.f32 %v2326_v1, %v1993_v8  ;;  %2670 = vmatpush.bf16.msrb.mxu2 %v4294_v49 }
 0x1a2   :  { %2671 = vmatpush.bf16.msrb.mxu2 %v4293_v50 }
 0x1a5   :  { %v2328_v9 = vpop.f32.mrf.mxu0 }
 0x1a6   :  { %v2329_v14 = vadd.f32 %v2328_v9, %v1993_v8 }
 0x1a7   :  { %2423 = vmatmul.bf16.vlgmr.msra.gmra.mxu3 %v1926_v11  ;;  %v4292_v11 = vld [vmem:[#allocation11 + $0x8] sm:$0xff] }
 0x1a8   :  { %2672 = vmatpush.bf16.msrb.mxu2 %v4292_v11 }
 0x1ac   :  { %2673 = vmatpush.bf16.msrb.mxu2 %v4291_v51 }
 0x1ad   :  { %v2340_v3 = vpop.f32.mrf.mxu1 }
 0x1ae   :  { %v2341_v15 = vadd.f32 %v2340_v3, %v2327_v13 }
 0x1b5   :  { %v2342_v10 = vpop.f32.mrf.mxu1 }
 0x1b6   :  { %v2343_v23 = vadd.f32 %v2342_v10, %v2329_v14 }
 0x1bd   :  { %v2382_v18 = vpop.f32.mrf.mxu0 }
 0x1be   :  { %v2396_v20 = vpop.f32.mrf.mxu1  ;;  %v2383_v28 = vadd.f32 %v2382_v18, %v1994_v26 }
 0x1c0   :  { %v2397_v32 = vadd.f32 %v2396_v20, %v2383_v28 }
 0x1c5   :  { %v2384_v27 = vpop.f32.mrf.mxu0 }
 0x1c6   :  { %v2398_v29 = vpop.f32.mrf.mxu1  ;;  %v2385_v31 = vadd.f32 %v2384_v27, %v1994_v26 }
 0x1c8   :  { %v2399_v34 = vadd.f32 %v2398_v29, %v2385_v31 }
 0x1f1   :  { %v2354_v4 = vpop.f32.mrf.mxu2 }
 0x1f2   :  { %v2355_v16 = vadd.f32 %v2354_v4, %v2341_v15 }
 0x1f9   :  { %v2356_v62 = vpop.f32.mrf.mxu2 }
 0x1fa   :  { %v2357_v19 = vadd.f32 %v2356_v62, %v2343_v23 }
 0x201   :  { %v2410_v24 = vpop.f32.mrf.mxu2 }
 0x202   :  { %v2411_v22 = vadd.f32 %v2410_v24, %v2397_v32 }
 0x209   :  { %v2412_v33 = vpop.f32.mrf.mxu2 }
 0x20a   :  { %v2413_v35 = vadd.f32 %v2412_v33, %v2399_v34 }
 0x21a   :  { %v2368_v12 = vpop.f32.mrf.mxu3 }
 0x21b   :  { %v2369_v37 = vadd.f32 %v2368_v12, %v2355_v16 }
 0x21d   :  { %v2429_v2 = vmax.f32 %v2369_v37, 0.0 }
 0x222   :  { %v2370_v42 = vpop.f32.mrf.mxu3 }
 0x223   :  { %v2371_v21 = vadd.f32 %v2370_v42, %v2357_v19 }
 0x225   :  { %v2431_v25 = vmax.f32 %v2371_v21, 0.0 }
 0x227   :  { %v2433_v41 = vpack.c.bf16 %v2431_v25, %v2429_v2 }
 0x229   :  { %2575 = vmatmul.bf16.vlgmr.msrb.gmra.mxu0 %v2433_v41 }
 0x22a   :  { %v2424_v30 = vpop.f32.mrf.mxu3 }
 0x22b   :  { %v2425_v36 = vadd.f32 %v2424_v30, %v2411_v22 }
 0x22d   :  { %v2430_v40 = vmax.f32 %v2425_v36, 0.0 }
 0x232   :  { %v2426_v38 = vpop.f32.mrf.mxu3 }
 0x233   :  { %v2427_v39 = vadd.f32 %v2426_v38, %v2413_v35 }
 0x235   :  { %v2432_v43 = vmax.f32 %v2427_v39, 0.0 }
 0x237   :  { %v2434_v44 = vpack.c.bf16 %v2432_v43, %v2430_v40 }
 0x239   :  { %2589 = vmatmul.bf16.vlgmr.msrb.gmra.mxu1 %v2434_v44 }
 0x2a6   :  { %v2576_v52 = vpop.f32.mrf.mxu0 }
 0x2a7   :  { %v2577_v57 = vadd.f32 %v4314_v53, %v2576_v52 }
 0x2ae   :  { %v2578_v17 = vpop.f32.mrf.mxu0 }
 0x2af   :  { %v2579_v54 = vadd.f32 %v4314_v53, %v2578_v17 }
 0x2b6   :  { %v2590_v0 = vpop.f32.mrf.mxu1 }
 0x2b7   :  { %v2591_v55 = vadd.f32 %v2590_v0, %v2577_v57 }
 0x2b9   :  { %v2595_v59 = vmax.f32 %v2591_v55, 0.0 }
 0x2be   :  { %v2592_v56 = vpop.f32.mrf.mxu1 }
 0x2bf   :  { %v2593_v58 = vadd.f32 %v2592_v56, %v2579_v54 }
 0x2c1   :  { %v2596_v60 = vmax.f32 %v2593_v58, 0.0 }
 0x2c3   :  { %v2597_v61 = vpack.c.bf16 %v2596_v60, %v2595_v59 }
 0x2c5   :  { %2674 = vmatmul.bf16.vlgmr.msrb.gmra.mxu2 %v2597_v61 }
 0x348   :  { %v2675_v1 = vpop.f32.mrf.mxu2 }
 0x349   :  { %v2676_v3 = vadd.f32 %v4315_v63, %v2675_v1 }
 0x34b   :  { %2680 = vst [vmem:[#allocation13] sm:$0xff] %v2676_v3 }
 0x350   :  { %v2677_v4 = vpop.f32.mrf.mxu2 }
 0x351   :  { %v2678_v5 = vadd.f32 %v4315_v63, %v2677_v4 }
 0x353   :  { %2681 = vst [vmem:[#allocation13 + $0x8] sm:$0xff] %v2678_v5 }
 0x354   :  { %2694 = dma.vmem_to_hbm [thread:$0]  %s2687_s26, 256, %s2689_s28, [#allocation4], %s4498_s21, %s4498_s21, %s4499_s22  }
 0x355   :  { %4492 = dma.done.wait [#allocation4], 256  }
 0x356   :  { %4493 = vsyncadd [#allocation4], 4294967040 }
 0x357   :  { %2699 = vsyncpa [#allocation3], 1 }
 0x358   :  { %2700 = vsyncpa [#allocation6], 1 }
 0x359   :  { %2701 = vsyncpa [#allocation9], 1 }
 0x35a   :  { %2702 = vsyncpa [#allocation12], 1 }
 0x35b   :  { %2703 = vsyncpa [#allocation4], 1 }

</bundles_post_ra>
